<compile_context>
chip_gen: v7x
topology: tpu7x:2x2x1
jax: 0.10.0
libtpu: 0.0.40
codegen_flags: <defaults>
</compile_context>

<pallas_src>
import functools

import jax
import jax.numpy as jnp
from jax.experimental import pallas as pl
from jax.experimental.pallas import tpu as pltpu

EPS = 1e-5  # PyTorch LayerNorm default

PARAM_ORDER = ("g1", "b1", "g2", "b2",
               "wq", "bq", "wk", "bk", "wv", "bv",
               "wo", "bo", "w1", "bm1", "w2", "bm2")


def _layernorm(x, gamma, beta):
    mu = jnp.mean(x, axis=-1, keepdims=True)
    var = jnp.mean((x - mu) ** 2, axis=-1, keepdims=True)
    return (x - mu) * jax.lax.rsqrt(var + EPS) * gamma + beta


def transformer_block_kernel(num_heads,
                             x_ref, pos_ref,
                             g1_ref, b1_ref, g2_ref, b2_ref,
                             wq_ref, bq_ref, wk_ref, bk_ref, wv_ref, bv_ref,
                             wo_ref, bo_ref,
                             w1_ref, bm1_ref, w2_ref, bm2_ref,
                             o_ref):
    # x_ref/pos_ref/o_ref: (1, S, D) per-grid-step blocks; weights are full arrays in VMEM.
    S, D = x_ref.shape[1], x_ref.shape[2]
    H = num_heads
    bf16 = jnp.bfloat16

    # encoder adds the positional embedding before every block
    x = x_ref[0] + pos_ref[0]                                      # (S, D) f32

    # x = norm_1(x)   (residual below attaches to this normalized tensor, per the spec)
    h = _layernorm(x, g1_ref[...], b1_ref[...])                    # (S, D) f32
    h_bf = h.astype(bf16)

    # Per-head projections: H plain 2-D MXU dots against host-prepacked (H, D, Dh) bf16
    # weights, stacked along a new leading (slab) dim -> (H, S, Dh) f32.  No lane slicing.
    def per_head_proj(w_ref, b_ref):
        heads = [jnp.dot(h_bf, w_ref[i], preferred_element_type=jnp.float32)
                 for i in range(H)]
        return jnp.stack(heads, axis=0) + b_ref[...]               # (H, S, Dh) f32

    qh = per_head_proj(wq_ref, bq_ref)      # 1/sqrt(Dh) already folded into wq / bq on host
    kh = per_head_proj(wk_ref, bk_ref)
    vh = per_head_proj(wv_ref, bv_ref)

    # scores + softmax (f32)
    s = jnp.einsum("hqd,hkd->hqk", qh.astype(bf16), kh.astype(bf16),
                   preferred_element_type=jnp.float32)             # (H, S, S) f32
    s = s - jnp.max(s, axis=-1, keepdims=True)
    p = jnp.exp(s)
    p = p * pl.reciprocal(jnp.sum(p, axis=-1, keepdims=True), approx=True)

    o_heads = jnp.einsum("hqk,hkd->hqd", p.astype(bf16), vh.astype(bf16),
                         preferred_element_type=jnp.float32)       # (H, S, Dh) f32

    # out-projection: accumulate H (S, Dh) x (Dh, D) MXU dots into one (S, D) f32 buffer.
    # No (H, S, D) f32 intermediate and no H-way sum.
    attn_out = jnp.dot(o_heads[0].astype(bf16), wo_ref[0],
                       preferred_element_type=jnp.float32)
    for i in range(1, H):
        attn_out = attn_out + jnp.dot(o_heads[i].astype(bf16), wo_ref[i],
                                      preferred_element_type=jnp.float32)
    attn_out = attn_out + bo_ref[...]                              # (S, D) f32

    # x = x + attention(x)
    h = h + attn_out

    # x = norm_2(x)
    h2 = _layernorm(h, g2_ref[...], b2_ref[...])

    # x = x + mlp(x)   (Linear -> GELU -> Linear)
    # NOTE: jax.nn.gelu defaults to the tanh approximation; PyTorch nn.GELU() defaults to
    # exact erf.  TODO(synk): switch to exact erf if training-grade parity is required.
    m = jnp.dot(h2.astype(bf16), w1_ref[...], preferred_element_type=jnp.float32) + bm1_ref[...]
    m = jax.nn.gelu(m)
    m = jnp.dot(m.astype(bf16), w2_ref[...], preferred_element_type=jnp.float32) + bm2_ref[...]

    o_ref[0] = h2 + m


def _prep_params(p, num_heads):
    # Host-side, one-time weight prep: (K, N) layouts, per-head repack, bf16 cast,
    # and 1/sqrt(Dh) folded into the Q projection.  Biases / LN params stay f32.
    D = p["wo"].shape[0]
    H = num_heads
    Dh = D // H
    scale = 1.0 / (Dh ** 0.5)
    bf = jnp.bfloat16

    def per_head_in(w):  # w: (D, D) PyTorch (out, in) -> (H, D, Dh), contract act last dim
        return w.T.reshape(D, H, Dh).transpose(1, 0, 2)

    wqkv, bqkv = p["wqkv"], p["bqkv"][0]
    return {
        "g1": p["g1"], "b1": p["b1"], "g2": p["g2"], "b2": p["b2"],
        "wq": (per_head_in(wqkv[:D]) * scale).astype(bf),          # (H, D, Dh), scale folded
        "bq": (bqkv[:D] * scale).reshape(H, 1, Dh),
        "wk": per_head_in(wqkv[D:2 * D]).astype(bf),
        "bk": bqkv[D:2 * D].reshape(H, 1, Dh),
        "wv": per_head_in(wqkv[2 * D:]).astype(bf),
        "bv": bqkv[2 * D:].reshape(H, 1, Dh),
        "wo": p["wo"].T.reshape(H, Dh, D).astype(bf),              # (H, Dh, D)
        "bo": p["bo"],
        "w1": p["w1"].T.astype(bf), "bm1": p["bm1"],               # (D, mlp)
        "w2": p["w2"].T.astype(bf), "bm2": p["bm2"],               # (mlp, D)
    }


def _block_call(x, pos, weights, num_heads):
    B, S, D = x.shape
    act_spec = pl.BlockSpec((1, S, D), lambda b: (b, 0, 0))
    # Grid-invariant weights: whole array resident in VMEM (single copy, no per-step DMA,
    # no double-buffering of weights).
    w_spec = pl.BlockSpec(memory_space=pltpu.MemorySpace.VMEM)
    kernel = functools.partial(transformer_block_kernel, num_heads)
    return pl.pallas_call(
        kernel,
        out_shape=jax.ShapeDtypeStruct((B, S, D), jnp.float32),
        grid_spec=pltpu.PrefetchScalarGridSpec(
            num_scalar_prefetch=0,
            grid=(B,),
            in_specs=[act_spec, act_spec] + [w_spec] * len(weights),
            out_specs=act_spec),
        compiler_params=pltpu.CompilerParams(
            dimension_semantics=("parallel",),
            vmem_limit_bytes=64 * 1024 * 1024),
    )(x, pos, *weights)


@functools.partial(jax.jit, static_argnums=(3,))
def _encoder_impl(x, pos, blocks_weights, num_heads):
    # for block in blocks: x = block(x + pos)   (pos re-added inside every block kernel)
    for w in blocks_weights:
        x = _block_call(x, pos, w, num_heads)
    return x


def transformer_encoder(x, pos, block_params, num_heads):
    # Weight prep done once, outside the jitted forward.
    blocks_weights = tuple(
        tuple(_prep_params(p, num_heads)[k] for k in PARAM_ORDER) for p in block_params)
    return _encoder_impl(x, pos, blocks_weights, num_heads)


# ----------------------- pure-JAX f32 reference (for checking) -----------------------
def _block_ref(x, pos, p, H):
    B, S, D = x.shape
    Dh = D // H
    xin = x + pos
    h = _layernorm(xin, p["g1"][0], p["b1"][0])
    qkv = h @ p["wqkv"].T + p["bqkv"][0]
    q, k, v = jnp.split(qkv, 3, axis=-1)
    qh = q.reshape(B, S, H, Dh).transpose(0, 2, 1, 3)
    kh = k.reshape(B, S, H, Dh).transpose(0, 2, 1, 3)
    vh = v.reshape(B, S, H, Dh).transpose(0, 2, 1, 3)
    s = jnp.einsum("bhqd,bhkd->bhqk", qh, kh) / (Dh ** 0.5)
    pattn = jax.nn.softmax(s, axis=-1)
    o = jnp.einsum("bhqk,bhkd->bhqd", pattn, vh)
    o = o.transpose(0, 2, 1, 3).reshape(B, S, D)
    attn_out = o @ p["wo"].T + p["bo"][0]
    h = h + attn_out
    h2 = _layernorm(h, p["g2"][0], p["b2"][0])
    m = jax.nn.gelu(h2 @ p["w1"].T + p["bm1"][0]) @ p["w2"].T + p["bm2"][0]
    return h2 + m


def _encoder_ref(x, pos, block_params, H):
    for p in block_params:
        x = _block_ref(x, pos, p, H)
    return x


# ------------------------------- parameter init -------------------------------
def init_block_params(key, D, mlp_dim):
    ks = jax.random.split(key, 10)
    s = 0.02
    return {
        "g1": 1.0 + s * jax.random.normal(ks[0], (1, D), jnp.float32),
        "b1": s * jax.random.normal(ks[1], (1, D), jnp.float32),
        "g2": 1.0 + s * jax.random.normal(ks[2], (1, D), jnp.float32),
        "b2": s * jax.random.normal(ks[3], (1, D), jnp.float32),
        "wqkv": s * jax.random.normal(ks[4], (3 * D, D), jnp.float32),
        "bqkv": s * jax.random.normal(ks[5], (1, 3 * D), jnp.float32),
        "wo": s * jax.random.normal(ks[6], (D, D), jnp.float32),
        "bo": s * jax.random.normal(ks[7], (1, D), jnp.float32),
        "w1": s * jax.random.normal(ks[8], (mlp_dim, D), jnp.float32),
        "bm1": jnp.zeros((1, mlp_dim), jnp.float32),
        "w2": s * jax.random.normal(ks[9], (D, mlp_dim), jnp.float32),
        "bm2": jnp.zeros((1, D), jnp.float32),
    }


if __name__ == "__main__":
    B, S, D = 2, 8, 32
    H = 4
    MLP_DIM = 64
    NUM_BLOCKS = 2

    key = jax.random.PRNGKey(0)
    kx, kp, *kblocks = jax.random.split(key, 2 + NUM_BLOCKS)
    x = jax.random.normal(kx, (B, S, D), jnp.float32)
    pos = jax.random.normal(kp, (B, S, D), jnp.float32)
    block_params = [init_block_params(kb, D, MLP_DIM) for kb in kblocks]

    out = transformer_encoder(x, pos, block_params, H)
    out = jax.block_until_ready(out)

    ref = _encoder_ref(x, pos, block_params, H)
    assert out.shape == (B, S, D)
    # kernel uses bf16 MXU operands (f32 accumulation) -> compare with a loose tolerance
    max_err = float(jnp.max(jnp.abs(out - ref)))
    assert jnp.allclose(out, ref, atol=1e-2, rtol=1e-2), max_err

    print("KERNEL_OK")
</pallas_src>

<mosaic_0001>
module attributes {stable_mosaic.version = 11 : i64} {
  func.func @transformer_block_kernel(%arg0: i32, %arg1: memref<1x8x32xf32, #tpu.memory_space<vmem>>, %arg2: memref<1x8x32xf32, #tpu.memory_space<vmem>>, %arg3: memref<1x32xf32, #tpu.memory_space<vmem>>, %arg4: memref<1x32xf32, #tpu.memory_space<vmem>>, %arg5: memref<1x32xf32, #tpu.memory_space<vmem>>, %arg6: memref<1x32xf32, #tpu.memory_space<vmem>>, %arg7: memref<4x32x8xbf16, #tpu.memory_space<vmem>>, %arg8: memref<4x1x8xf32, #tpu.memory_space<vmem>>, %arg9: memref<4x32x8xbf16, #tpu.memory_space<vmem>>, %arg10: memref<4x1x8xf32, #tpu.memory_space<vmem>>, %arg11: memref<4x32x8xbf16, #tpu.memory_space<vmem>>, %arg12: memref<4x1x8xf32, #tpu.memory_space<vmem>>, %arg13: memref<4x8x32xbf16, #tpu.memory_space<vmem>>, %arg14: memref<1x32xf32, #tpu.memory_space<vmem>>, %arg15: memref<32x64xbf16, #tpu.memory_space<vmem>>, %arg16: memref<1x64xf32, #tpu.memory_space<vmem>>, %arg17: memref<64x32xbf16, #tpu.memory_space<vmem>>, %arg18: memref<1x32xf32, #tpu.memory_space<vmem>>, %arg19: memref<1x8x32xf32, #tpu.memory_space<vmem>>) attributes {dimension_semantics = [#tpu.dimension_semantics<parallel>], iteration_bounds = array<i64: 2>, scalar_prefetch = 0 : i64, scratch_operands = 0 : i64, tpu.core_type = #tpu.core_type<tc>, window_params = [{transform_indices = @transform_0, window_bounds = array<i64: 1, 8, 32>}, {transform_indices = @transform_1, window_bounds = array<i64: 1, 8, 32>}, {pipeline_mode = #tpu.pipeline_mode<synchronous>, transform_indices = @transform_2, window_bounds = array<i64: 1, 32>}, {pipeline_mode = #tpu.pipeline_mode<synchronous>, transform_indices = @transform_3, window_bounds = array<i64: 1, 32>}, {pipeline_mode = #tpu.pipeline_mode<synchronous>, transform_indices = @transform_4, window_bounds = array<i64: 1, 32>}, {pipeline_mode = #tpu.pipeline_mode<synchronous>, transform_indices = @transform_5, window_bounds = array<i64: 1, 32>}, {pipeline_mode = #tpu.pipeline_mode<synchronous>, transform_indices = @transform_6, window_bounds = array<i64: 4, 32, 8>}, {pipeline_mode = #tpu.pipeline_mode<synchronous>, transform_indices = @transform_7, window_bounds = array<i64: 4, 1, 8>}, {pipeline_mode = #tpu.pipeline_mode<synchronous>, transform_indices = @transform_8, window_bounds = array<i64: 4, 32, 8>}, {pipeline_mode = #tpu.pipeline_mode<synchronous>, transform_indices = @transform_9, window_bounds = array<i64: 4, 1, 8>}, {pipeline_mode = #tpu.pipeline_mode<synchronous>, transform_indices = @transform_10, window_bounds = array<i64: 4, 32, 8>}, {pipeline_mode = #tpu.pipeline_mode<synchronous>, transform_indices = @transform_11, window_bounds = array<i64: 4, 1, 8>}, {pipeline_mode = #tpu.pipeline_mode<synchronous>, transform_indices = @transform_12, window_bounds = array<i64: 4, 8, 32>}, {pipeline_mode = #tpu.pipeline_mode<synchronous>, transform_indices = @transform_13, window_bounds = array<i64: 1, 32>}, {pipeline_mode = #tpu.pipeline_mode<synchronous>, transform_indices = @transform_14, window_bounds = array<i64: 32, 64>}, {pipeline_mode = #tpu.pipeline_mode<synchronous>, transform_indices = @transform_15, window_bounds = array<i64: 1, 64>}, {pipeline_mode = #tpu.pipeline_mode<synchronous>, transform_indices = @transform_16, window_bounds = array<i64: 64, 32>}, {pipeline_mode = #tpu.pipeline_mode<synchronous>, transform_indices = @transform_17, window_bounds = array<i64: 1, 32>}, {transform_indices = @transform_18, window_bounds = array<i64: 1, 8, 32>}]} {
    %c0 = arith.constant 0 : index
    %c0_0 = arith.constant 0 : index
    %c0_1 = arith.constant 0 : index
    %0 = vector.load %arg1[%c0, %c0_0, %c0_1] : memref<1x8x32xf32, #tpu.memory_space<vmem>>, vector<1x8x32xf32>
    %1 = vector.shape_cast %0 : vector<1x8x32xf32> to vector<8x32xf32>
    %c0_2 = arith.constant 0 : index
    %c0_3 = arith.constant 0 : index
    %c0_4 = arith.constant 0 : index
    %2 = vector.load %arg2[%c0_2, %c0_3, %c0_4] : memref<1x8x32xf32, #tpu.memory_space<vmem>>, vector<1x8x32xf32>
    %3 = vector.shape_cast %2 : vector<1x8x32xf32> to vector<8x32xf32>
    %4 = arith.addf %1, %3 : vector<8x32xf32>
    %c0_5 = arith.constant 0 : index
    %c0_6 = arith.constant 0 : index
    %5 = vector.load %arg3[%c0_5, %c0_6] : memref<1x32xf32, #tpu.memory_space<vmem>>, vector<1x32xf32>
    %c0_7 = arith.constant 0 : index
    %c0_8 = arith.constant 0 : index
    %6 = vector.load %arg4[%c0_7, %c0_8] : memref<1x32xf32, #tpu.memory_space<vmem>>, vector<1x32xf32>
    %cst = arith.constant dense<0.000000e+00> : vector<8xf32>
    %7 = vector.multi_reduction <add>, %4, %cst [1] : vector<8x32xf32> to vector<8xf32>
    %8 = vector.shape_cast %7 : vector<8xf32> to vector<8x1xf32>
    %cst_9 = arith.constant 3.200000e+01 : f32
    %9 = vector.broadcast %cst_9 : f32 to vector<8x1xf32>
    %10 = arith.divf %8, %9 : vector<8x1xf32>
    %11 = vector.broadcast %10 : vector<8x1xf32> to vector<8x32xf32>
    %12 = arith.subf %4, %11 : vector<8x32xf32>
    %13 = arith.mulf %12, %12 : vector<8x32xf32>
    %cst_10 = arith.constant dense<0.000000e+00> : vector<8xf32>
    %14 = vector.multi_reduction <add>, %13, %cst_10 [1] : vector<8x32xf32> to vector<8xf32>
    %15 = vector.shape_cast %14 : vector<8xf32> to vector<8x1xf32>
    %cst_11 = arith.constant 3.200000e+01 : f32
    %16 = vector.broadcast %cst_11 : f32 to vector<8x1xf32>
    %17 = arith.divf %15, %16 : vector<8x1xf32>
    %18 = vector.broadcast %10 : vector<8x1xf32> to vector<8x32xf32>
    %19 = arith.subf %4, %18 : vector<8x32xf32>
    %cst_12 = arith.constant 9.99999974E-6 : f32
    %20 = vector.broadcast %cst_12 : f32 to vector<8x1xf32>
    %21 = arith.addf %17, %20 : vector<8x1xf32>
    %22 = math.rsqrt %21 : vector<8x1xf32>
    %23 = vector.broadcast %22 : vector<8x1xf32> to vector<8x32xf32>
    %24 = arith.mulf %19, %23 : vector<8x32xf32>
    %25 = vector.broadcast %5 : vector<1x32xf32> to vector<8x32xf32>
    %26 = arith.mulf %24, %25 : vector<8x32xf32>
    %27 = vector.broadcast %6 : vector<1x32xf32> to vector<8x32xf32>
    %28 = arith.addf %26, %27 : vector<8x32xf32>
    %29 = arith.truncf %28 : vector<8x32xf32> to vector<8x32xbf16>
    %c0_13 = arith.constant 0 : index
    %c0_14 = arith.constant 0 : index
    %c0_15 = arith.constant 0 : index
    %30 = vector.load %arg7[%c0_13, %c0_14, %c0_15] : memref<4x32x8xbf16, #tpu.memory_space<vmem>>, vector<1x32x8xbf16>
    %31 = vector.shape_cast %30 : vector<1x32x8xbf16> to vector<32x8xbf16>
    %cst_16 = arith.constant dense<0.000000e+00> : vector<8x8xf32>
    %32 = tpu.matmul %29, %31, %cst_16 {dimension_numbers = #tpu.dot_dimension_numbers<[1], [0], [0], [1], [0, 0, 1, 1], [], []>} : vector<8x32xbf16>, vector<32x8xbf16>, vector<8x8xf32> -> vector<8x8xf32>
    %c1 = arith.constant 1 : index
    %c0_17 = arith.constant 0 : index
    %c0_18 = arith.constant 0 : index
    %33 = vector.load %arg7[%c1, %c0_17, %c0_18] : memref<4x32x8xbf16, #tpu.memory_space<vmem>>, vector<1x32x8xbf16>
    %34 = vector.shape_cast %33 : vector<1x32x8xbf16> to vector<32x8xbf16>
    %cst_19 = arith.constant dense<0.000000e+00> : vector<8x8xf32>
    %35 = tpu.matmul %29, %34, %cst_19 {dimension_numbers = #tpu.dot_dimension_numbers<[1], [0], [0], [1], [0, 0, 1, 1], [], []>} : vector<8x32xbf16>, vector<32x8xbf16>, vector<8x8xf32> -> vector<8x8xf32>
    %c2 = arith.constant 2 : index
    %c0_20 = arith.constant 0 : index
    %c0_21 = arith.constant 0 : index
    %36 = vector.load %arg7[%c2, %c0_20, %c0_21] : memref<4x32x8xbf16, #tpu.memory_space<vmem>>, vector<1x32x8xbf16>
    %37 = vector.shape_cast %36 : vector<1x32x8xbf16> to vector<32x8xbf16>
    %cst_22 = arith.constant dense<0.000000e+00> : vector<8x8xf32>
    %38 = tpu.matmul %29, %37, %cst_22 {dimension_numbers = #tpu.dot_dimension_numbers<[1], [0], [0], [1], [0, 0, 1, 1], [], []>} : vector<8x32xbf16>, vector<32x8xbf16>, vector<8x8xf32> -> vector<8x8xf32>
    %c3 = arith.constant 3 : index
    %c0_23 = arith.constant 0 : index
    %c0_24 = arith.constant 0 : index
    %39 = vector.load %arg7[%c3, %c0_23, %c0_24] : memref<4x32x8xbf16, #tpu.memory_space<vmem>>, vector<1x32x8xbf16>
    %40 = vector.shape_cast %39 : vector<1x32x8xbf16> to vector<32x8xbf16>
    %cst_25 = arith.constant dense<0.000000e+00> : vector<8x8xf32>
    %41 = tpu.matmul %29, %40, %cst_25 {dimension_numbers = #tpu.dot_dimension_numbers<[1], [0], [0], [1], [0, 0, 1, 1], [], []>} : vector<8x32xbf16>, vector<32x8xbf16>, vector<8x8xf32> -> vector<8x8xf32>
    %42 = vector.shape_cast %32 : vector<8x8xf32> to vector<1x8x8xf32>
    %43 = vector.shape_cast %35 : vector<8x8xf32> to vector<1x8x8xf32>
    %44 = vector.shape_cast %38 : vector<8x8xf32> to vector<1x8x8xf32>
    %45 = vector.shape_cast %41 : vector<8x8xf32> to vector<1x8x8xf32>
    %46 = tpu.concatenate %42, %43, %44, %45 in 0 : vector<1x8x8xf32>, vector<1x8x8xf32>, vector<1x8x8xf32>, vector<1x8x8xf32> -> vector<4x8x8xf32>
    %c0_26 = arith.constant 0 : index
    %c0_27 = arith.constant 0 : index
    %c0_28 = arith.constant 0 : index
    %47 = vector.load %arg8[%c0_26, %c0_27, %c0_28] : memref<4x1x8xf32, #tpu.memory_space<vmem>>, vector<4x1x8xf32>
    %48 = vector.broadcast %47 : vector<4x1x8xf32> to vector<4x8x8xf32>
    %49 = arith.addf %46, %48 : vector<4x8x8xf32>
    %c0_29 = arith.constant 0 : index
    %c0_30 = arith.constant 0 : index
    %c0_31 = arith.constant 0 : index
    %50 = vector.load %arg9[%c0_29, %c0_30, %c0_31] : memref<4x32x8xbf16, #tpu.memory_space<vmem>>, vector<1x32x8xbf16>
    %51 = vector.shape_cast %50 : vector<1x32x8xbf16> to vector<32x8xbf16>
    %cst_32 = arith.constant dense<0.000000e+00> : vector<8x8xf32>
    %52 = tpu.matmul %29, %51, %cst_32 {dimension_numbers = #tpu.dot_dimension_numbers<[1], [0], [0], [1], [0, 0, 1, 1], [], []>} : vector<8x32xbf16>, vector<32x8xbf16>, vector<8x8xf32> -> vector<8x8xf32>
    %c1_33 = arith.constant 1 : index
    %c0_34 = arith.constant 0 : index
    %c0_35 = arith.constant 0 : index
    %53 = vector.load %arg9[%c1_33, %c0_34, %c0_35] : memref<4x32x8xbf16, #tpu.memory_space<vmem>>, vector<1x32x8xbf16>
    %54 = vector.shape_cast %53 : vector<1x32x8xbf16> to vector<32x8xbf16>
    %cst_36 = arith.constant dense<0.000000e+00> : vector<8x8xf32>
    %55 = tpu.matmul %29, %54, %cst_36 {dimension_numbers = #tpu.dot_dimension_numbers<[1], [0], [0], [1], [0, 0, 1, 1], [], []>} : vector<8x32xbf16>, vector<32x8xbf16>, vector<8x8xf32> -> vector<8x8xf32>
    %c2_37 = arith.constant 2 : index
    %c0_38 = arith.constant 0 : index
    %c0_39 = arith.constant 0 : index
    %56 = vector.load %arg9[%c2_37, %c0_38, %c0_39] : memref<4x32x8xbf16, #tpu.memory_space<vmem>>, vector<1x32x8xbf16>
    %57 = vector.shape_cast %56 : vector<1x32x8xbf16> to vector<32x8xbf16>
    %cst_40 = arith.constant dense<0.000000e+00> : vector<8x8xf32>
    %58 = tpu.matmul %29, %57, %cst_40 {dimension_numbers = #tpu.dot_dimension_numbers<[1], [0], [0], [1], [0, 0, 1, 1], [], []>} : vector<8x32xbf16>, vector<32x8xbf16>, vector<8x8xf32> -> vector<8x8xf32>
    %c3_41 = arith.constant 3 : index
    %c0_42 = arith.constant 0 : index
    %c0_43 = arith.constant 0 : index
    %59 = vector.load %arg9[%c3_41, %c0_42, %c0_43] : memref<4x32x8xbf16, #tpu.memory_space<vmem>>, vector<1x32x8xbf16>
    %60 = vector.shape_cast %59 : vector<1x32x8xbf16> to vector<32x8xbf16>
    %cst_44 = arith.constant dense<0.000000e+00> : vector<8x8xf32>
    %61 = tpu.matmul %29, %60, %cst_44 {dimension_numbers = #tpu.dot_dimension_numbers<[1], [0], [0], [1], [0, 0, 1, 1], [], []>} : vector<8x32xbf16>, vector<32x8xbf16>, vector<8x8xf32> -> vector<8x8xf32>
    %62 = vector.shape_cast %52 : vector<8x8xf32> to vector<1x8x8xf32>
    %63 = vector.shape_cast %55 : vector<8x8xf32> to vector<1x8x8xf32>
    %64 = vector.shape_cast %58 : vector<8x8xf32> to vector<1x8x8xf32>
    %65 = vector.shape_cast %61 : vector<8x8xf32> to vector<1x8x8xf32>
    %66 = tpu.concatenate %62, %63, %64, %65 in 0 : vector<1x8x8xf32>, vector<1x8x8xf32>, vector<1x8x8xf32>, vector<1x8x8xf32> -> vector<4x8x8xf32>
    %c0_45 = arith.constant 0 : index
    %c0_46 = arith.constant 0 : index
    %c0_47 = arith.constant 0 : index
    %67 = vector.load %arg10[%c0_45, %c0_46, %c0_47] : memref<4x1x8xf32, #tpu.memory_space<vmem>>, vector<4x1x8xf32>
    %68 = vector.broadcast %67 : vector<4x1x8xf32> to vector<4x8x8xf32>
    %69 = arith.addf %66, %68 : vector<4x8x8xf32>
    %c0_48 = arith.constant 0 : index
    %c0_49 = arith.constant 0 : index
    %c0_50 = arith.constant 0 : index
    %70 = vector.load %arg11[%c0_48, %c0_49, %c0_50] : memref<4x32x8xbf16, #tpu.memory_space<vmem>>, vector<1x32x8xbf16>
    %71 = vector.shape_cast %70 : vector<1x32x8xbf16> to vector<32x8xbf16>
    %cst_51 = arith.constant dense<0.000000e+00> : vector<8x8xf32>
    %72 = tpu.matmul %29, %71, %cst_51 {dimension_numbers = #tpu.dot_dimension_numbers<[1], [0], [0], [1], [0, 0, 1, 1], [], []>} : vector<8x32xbf16>, vector<32x8xbf16>, vector<8x8xf32> -> vector<8x8xf32>
    %c1_52 = arith.constant 1 : index
    %c0_53 = arith.constant 0 : index
    %c0_54 = arith.constant 0 : index
    %73 = vector.load %arg11[%c1_52, %c0_53, %c0_54] : memref<4x32x8xbf16, #tpu.memory_space<vmem>>, vector<1x32x8xbf16>
    %74 = vector.shape_cast %73 : vector<1x32x8xbf16> to vector<32x8xbf16>
    %cst_55 = arith.constant dense<0.000000e+00> : vector<8x8xf32>
    %75 = tpu.matmul %29, %74, %cst_55 {dimension_numbers = #tpu.dot_dimension_numbers<[1], [0], [0], [1], [0, 0, 1, 1], [], []>} : vector<8x32xbf16>, vector<32x8xbf16>, vector<8x8xf32> -> vector<8x8xf32>
    %c2_56 = arith.constant 2 : index
    %c0_57 = arith.constant 0 : index
    %c0_58 = arith.constant 0 : index
    %76 = vector.load %arg11[%c2_56, %c0_57, %c0_58] : memref<4x32x8xbf16, #tpu.memory_space<vmem>>, vector<1x32x8xbf16>
    %77 = vector.shape_cast %76 : vector<1x32x8xbf16> to vector<32x8xbf16>
    %cst_59 = arith.constant dense<0.000000e+00> : vector<8x8xf32>
    %78 = tpu.matmul %29, %77, %cst_59 {dimension_numbers = #tpu.dot_dimension_numbers<[1], [0], [0], [1], [0, 0, 1, 1], [], []>} : vector<8x32xbf16>, vector<32x8xbf16>, vector<8x8xf32> -> vector<8x8xf32>
    %c3_60 = arith.constant 3 : index
    %c0_61 = arith.constant 0 : index
    %c0_62 = arith.constant 0 : index
    %79 = vector.load %arg11[%c3_60, %c0_61, %c0_62] : memref<4x32x8xbf16, #tpu.memory_space<vmem>>, vector<1x32x8xbf16>
    %80 = vector.shape_cast %79 : vector<1x32x8xbf16> to vector<32x8xbf16>
    %cst_63 = arith.constant dense<0.000000e+00> : vector<8x8xf32>
    %81 = tpu.matmul %29, %80, %cst_63 {dimension_numbers = #tpu.dot_dimension_numbers<[1], [0], [0], [1], [0, 0, 1, 1], [], []>} : vector<8x32xbf16>, vector<32x8xbf16>, vector<8x8xf32> -> vector<8x8xf32>
    %82 = vector.shape_cast %72 : vector<8x8xf32> to vector<1x8x8xf32>
    %83 = vector.shape_cast %75 : vector<8x8xf32> to vector<1x8x8xf32>
    %84 = vector.shape_cast %78 : vector<8x8xf32> to vector<1x8x8xf32>
    %85 = vector.shape_cast %81 : vector<8x8xf32> to vector<1x8x8xf32>
    %86 = tpu.concatenate %82, %83, %84, %85 in 0 : vector<1x8x8xf32>, vector<1x8x8xf32>, vector<1x8x8xf32>, vector<1x8x8xf32> -> vector<4x8x8xf32>
    %c0_64 = arith.constant 0 : index
    %c0_65 = arith.constant 0 : index
    %c0_66 = arith.constant 0 : index
    %87 = vector.load %arg12[%c0_64, %c0_65, %c0_66] : memref<4x1x8xf32, #tpu.memory_space<vmem>>, vector<4x1x8xf32>
    %88 = vector.broadcast %87 : vector<4x1x8xf32> to vector<4x8x8xf32>
    %89 = arith.addf %86, %88 : vector<4x8x8xf32>
    %90 = arith.truncf %49 : vector<4x8x8xf32> to vector<4x8x8xbf16>
    %91 = arith.truncf %69 : vector<4x8x8xf32> to vector<4x8x8xbf16>
    "tpu.trace_start"() <{level = 10 : i32, message = "hqd,hkd->hqk"}> : () -> ()
    %cst_67 = arith.constant dense<0.000000e+00> : vector<4x8x8xf32>
    %92 = tpu.matmul %90, %91, %cst_67 {dimension_numbers = #tpu.dot_dimension_numbers<[2], [2], [1], [1], [0, 0, 0, 1, 1, 1], [0], [0]>} : vector<4x8x8xbf16>, vector<4x8x8xbf16>, vector<4x8x8xf32> -> vector<4x8x8xf32>
    "tpu.trace_stop"() : () -> ()
    %cst_68 = arith.constant dense<0xFF800000> : vector<4x8xf32>
    %93 = vector.multi_reduction <maximumf>, %92, %cst_68 [2] : vector<4x8x8xf32> to vector<4x8xf32>
    %94 = vector.shape_cast %93 : vector<4x8xf32> to vector<4x8x1xf32>
    %95 = vector.broadcast %94 : vector<4x8x1xf32> to vector<4x8x8xf32>
    %96 = arith.subf %92, %95 : vector<4x8x8xf32>
    %97 = math.exp %96 : vector<4x8x8xf32>
    %cst_69 = arith.constant dense<0.000000e+00> : vector<4x8xf32>
    %98 = vector.multi_reduction <add>, %97, %cst_69 [2] : vector<4x8x8xf32> to vector<4x8xf32>
    %99 = vector.shape_cast %98 : vector<4x8xf32> to vector<4x8x1xf32>
    %100 = tpu.reciprocal %99 {approx = true} : vector<4x8x1xf32> -> vector<4x8x1xf32>
    %101 = vector.broadcast %100 : vector<4x8x1xf32> to vector<4x8x8xf32>
    %102 = arith.mulf %97, %101 : vector<4x8x8xf32>
    %103 = arith.truncf %102 : vector<4x8x8xf32> to vector<4x8x8xbf16>
    %104 = arith.truncf %89 : vector<4x8x8xf32> to vector<4x8x8xbf16>
    "tpu.trace_start"() <{level = 10 : i32, message = "hqk,hkd->hqd"}> : () -> ()
    %cst_70 = arith.constant dense<0.000000e+00> : vector<4x8x8xf32>
    %105 = tpu.matmul %103, %104, %cst_70 {dimension_numbers = #tpu.dot_dimension_numbers<[2], [1], [1], [2], [0, 0, 0, 1, 1, 2], [0], [0]>} : vector<4x8x8xbf16>, vector<4x8x8xbf16>, vector<4x8x8xf32> -> vector<4x8x8xf32>
    "tpu.trace_stop"() : () -> ()
    %106 = vector.extract_strided_slice %105 {offsets = [0, 0, 0], sizes = [1, 8, 8], strides = [1, 1, 1]} : vector<4x8x8xf32> to vector<1x8x8xf32>
    %107 = vector.shape_cast %106 : vector<1x8x8xf32> to vector<8x8xf32>
    %108 = arith.truncf %107 : vector<8x8xf32> to vector<8x8xbf16>
    %c0_71 = arith.constant 0 : index
    %c0_72 = arith.constant 0 : index
    %c0_73 = arith.constant 0 : index
    %109 = vector.load %arg13[%c0_71, %c0_72, %c0_73] : memref<4x8x32xbf16, #tpu.memory_space<vmem>>, vector<1x8x32xbf16>
    %110 = vector.shape_cast %109 : vector<1x8x32xbf16> to vector<8x32xbf16>
    %cst_74 = arith.constant dense<0.000000e+00> : vector<8x32xf32>
    %111 = tpu.matmul %108, %110, %cst_74 {dimension_numbers = #tpu.dot_dimension_numbers<[1], [0], [0], [1], [0, 0, 1, 1], [], []>} : vector<8x8xbf16>, vector<8x32xbf16>, vector<8x32xf32> -> vector<8x32xf32>
    %112 = vector.extract_strided_slice %105 {offsets = [1, 0, 0], sizes = [1, 8, 8], strides = [1, 1, 1]} : vector<4x8x8xf32> to vector<1x8x8xf32>
    %113 = vector.shape_cast %112 : vector<1x8x8xf32> to vector<8x8xf32>
    %114 = arith.truncf %113 : vector<8x8xf32> to vector<8x8xbf16>
    %c1_75 = arith.constant 1 : index
    %c0_76 = arith.constant 0 : index
    %c0_77 = arith.constant 0 : index
    %115 = vector.load %arg13[%c1_75, %c0_76, %c0_77] : memref<4x8x32xbf16, #tpu.memory_space<vmem>>, vector<1x8x32xbf16>
    %116 = vector.shape_cast %115 : vector<1x8x32xbf16> to vector<8x32xbf16>
    %cst_78 = arith.constant dense<0.000000e+00> : vector<8x32xf32>
    %117 = tpu.matmul %114, %116, %cst_78 {dimension_numbers = #tpu.dot_dimension_numbers<[1], [0], [0], [1], [0, 0, 1, 1], [], []>} : vector<8x8xbf16>, vector<8x32xbf16>, vector<8x32xf32> -> vector<8x32xf32>
    %118 = arith.addf %111, %117 : vector<8x32xf32>
    %119 = vector.extract_strided_slice %105 {offsets = [2, 0, 0], sizes = [1, 8, 8], strides = [1, 1, 1]} : vector<4x8x8xf32> to vector<1x8x8xf32>
    %120 = vector.shape_cast %119 : vector<1x8x8xf32> to vector<8x8xf32>
    %121 = arith.truncf %120 : vector<8x8xf32> to vector<8x8xbf16>
    %c2_79 = arith.constant 2 : index
    %c0_80 = arith.constant 0 : index
    %c0_81 = arith.constant 0 : index
    %122 = vector.load %arg13[%c2_79, %c0_80, %c0_81] : memref<4x8x32xbf16, #tpu.memory_space<vmem>>, vector<1x8x32xbf16>
    %123 = vector.shape_cast %122 : vector<1x8x32xbf16> to vector<8x32xbf16>
    %cst_82 = arith.constant dense<0.000000e+00> : vector<8x32xf32>
    %124 = tpu.matmul %121, %123, %cst_82 {dimension_numbers = #tpu.dot_dimension_numbers<[1], [0], [0], [1], [0, 0, 1, 1], [], []>} : vector<8x8xbf16>, vector<8x32xbf16>, vector<8x32xf32> -> vector<8x32xf32>
    %125 = arith.addf %118, %124 : vector<8x32xf32>
    %126 = vector.extract_strided_slice %105 {offsets = [3, 0, 0], sizes = [1, 8, 8], strides = [1, 1, 1]} : vector<4x8x8xf32> to vector<1x8x8xf32>
    %127 = vector.shape_cast %126 : vector<1x8x8xf32> to vector<8x8xf32>
    %128 = arith.truncf %127 : vector<8x8xf32> to vector<8x8xbf16>
    %c3_83 = arith.constant 3 : index
    %c0_84 = arith.constant 0 : index
    %c0_85 = arith.constant 0 : index
    %129 = vector.load %arg13[%c3_83, %c0_84, %c0_85] : memref<4x8x32xbf16, #tpu.memory_space<vmem>>, vector<1x8x32xbf16>
    %130 = vector.shape_cast %129 : vector<1x8x32xbf16> to vector<8x32xbf16>
    %cst_86 = arith.constant dense<0.000000e+00> : vector<8x32xf32>
    %131 = tpu.matmul %128, %130, %cst_86 {dimension_numbers = #tpu.dot_dimension_numbers<[1], [0], [0], [1], [0, 0, 1, 1], [], []>} : vector<8x8xbf16>, vector<8x32xbf16>, vector<8x32xf32> -> vector<8x32xf32>
    %132 = arith.addf %125, %131 : vector<8x32xf32>
    %c0_87 = arith.constant 0 : index
    %c0_88 = arith.constant 0 : index
    %133 = vector.load %arg14[%c0_87, %c0_88] : memref<1x32xf32, #tpu.memory_space<vmem>>, vector<1x32xf32>
    %134 = vector.broadcast %133 : vector<1x32xf32> to vector<8x32xf32>
    %135 = arith.addf %132, %134 : vector<8x32xf32>
    %136 = arith.addf %28, %135 : vector<8x32xf32>
    %c0_89 = arith.constant 0 : index
    %c0_90 = arith.constant 0 : index
    %137 = vector.load %arg5[%c0_89, %c0_90] : memref<1x32xf32, #tpu.memory_space<vmem>>, vector<1x32xf32>
    %c0_91 = arith.constant 0 : index
    %c0_92 = arith.constant 0 : index
    %138 = vector.load %arg6[%c0_91, %c0_92] : memref<1x32xf32, #tpu.memory_space<vmem>>, vector<1x32xf32>
    %cst_93 = arith.constant dense<0.000000e+00> : vector<8xf32>
    %139 = vector.multi_reduction <add>, %136, %cst_93 [1] : vector<8x32xf32> to vector<8xf32>
    %140 = vector.shape_cast %139 : vector<8xf32> to vector<8x1xf32>
    %cst_94 = arith.constant 3.200000e+01 : f32
    %141 = vector.broadcast %cst_94 : f32 to vector<8x1xf32>
    %142 = arith.divf %140, %141 : vector<8x1xf32>
    %143 = vector.broadcast %142 : vector<8x1xf32> to vector<8x32xf32>
    %144 = arith.subf %136, %143 : vector<8x32xf32>
    %145 = arith.mulf %144, %144 : vector<8x32xf32>
    %cst_95 = arith.constant dense<0.000000e+00> : vector<8xf32>
    %146 = vector.multi_reduction <add>, %145, %cst_95 [1] : vector<8x32xf32> to vector<8xf32>
    %147 = vector.shape_cast %146 : vector<8xf32> to vector<8x1xf32>
    %cst_96 = arith.constant 3.200000e+01 : f32
    %148 = vector.broadcast %cst_96 : f32 to vector<8x1xf32>
    %149 = arith.divf %147, %148 : vector<8x1xf32>
    %150 = vector.broadcast %142 : vector<8x1xf32> to vector<8x32xf32>
    %151 = arith.subf %136, %150 : vector<8x32xf32>
    %cst_97 = arith.constant 9.99999974E-6 : f32
    %152 = vector.broadcast %cst_97 : f32 to vector<8x1xf32>
    %153 = arith.addf %149, %152 : vector<8x1xf32>
    %154 = math.rsqrt %153 : vector<8x1xf32>
    %155 = vector.broadcast %154 : vector<8x1xf32> to vector<8x32xf32>
    %156 = arith.mulf %151, %155 : vector<8x32xf32>
    %157 = vector.broadcast %137 : vector<1x32xf32> to vector<8x32xf32>
    %158 = arith.mulf %156, %157 : vector<8x32xf32>
    %159 = vector.broadcast %138 : vector<1x32xf32> to vector<8x32xf32>
    %160 = arith.addf %158, %159 : vector<8x32xf32>
    %161 = arith.truncf %160 : vector<8x32xf32> to vector<8x32xbf16>
    %c0_98 = arith.constant 0 : index
    %c0_99 = arith.constant 0 : index
    %162 = vector.load %arg15[%c0_98, %c0_99] : memref<32x64xbf16, #tpu.memory_space<vmem>>, vector<32x64xbf16>
    %cst_100 = arith.constant dense<0.000000e+00> : vector<8x64xf32>
    %163 = tpu.matmul %161, %162, %cst_100 {dimension_numbers = #tpu.dot_dimension_numbers<[1], [0], [0], [1], [0, 0, 1, 1], [], []>} : vector<8x32xbf16>, vector<32x64xbf16>, vector<8x64xf32> -> vector<8x64xf32>
    %c0_101 = arith.constant 0 : index
    %c0_102 = arith.constant 0 : index
    %164 = vector.load %arg16[%c0_101, %c0_102] : memref<1x64xf32, #tpu.memory_space<vmem>>, vector<1x64xf32>
    %165 = vector.broadcast %164 : vector<1x64xf32> to vector<8x64xf32>
    %166 = arith.addf %163, %165 : vector<8x64xf32>
    %167 = arith.mulf %166, %166 : vector<8x64xf32>
    %168 = arith.mulf %166, %167 : vector<8x64xf32>
    %cst_103 = arith.constant 4.471500e-02 : f32
    %169 = vector.broadcast %cst_103 : f32 to vector<8x64xf32>
    %170 = arith.mulf %169, %168 : vector<8x64xf32>
    %171 = arith.addf %166, %170 : vector<8x64xf32>
    %cst_104 = arith.constant 0.797884583 : f32
    %172 = vector.broadcast %cst_104 : f32 to vector<8x64xf32>
    %173 = arith.mulf %172, %171 : vector<8x64xf32>
    %174 = math.tanh %173 : vector<8x64xf32>
    %cst_105 = arith.constant 1.000000e+00 : f32
    %175 = vector.broadcast %cst_105 : f32 to vector<8x64xf32>
    %176 = arith.addf %175, %174 : vector<8x64xf32>
    %cst_106 = arith.constant 5.000000e-01 : f32
    %177 = vector.broadcast %cst_106 : f32 to vector<8x64xf32>
    %178 = arith.mulf %177, %176 : vector<8x64xf32>
    %179 = arith.mulf %166, %178 : vector<8x64xf32>
    %180 = arith.truncf %179 : vector<8x64xf32> to vector<8x64xbf16>
    %c0_107 = arith.constant 0 : index
    %c0_108 = arith.constant 0 : index
    %181 = vector.load %arg17[%c0_107, %c0_108] : memref<64x32xbf16, #tpu.memory_space<vmem>>, vector<64x32xbf16>
    %cst_109 = arith.constant dense<0.000000e+00> : vector<8x32xf32>
    %182 = tpu.matmul %180, %181, %cst_109 {dimension_numbers = #tpu.dot_dimension_numbers<[1], [0], [0], [1], [0, 0, 1, 1], [], []>} : vector<8x64xbf16>, vector<64x32xbf16>, vector<8x32xf32> -> vector<8x32xf32>
    %c0_110 = arith.constant 0 : index
    %c0_111 = arith.constant 0 : index
    %183 = vector.load %arg18[%c0_110, %c0_111] : memref<1x32xf32, #tpu.memory_space<vmem>>, vector<1x32xf32>
    %184 = vector.broadcast %183 : vector<1x32xf32> to vector<8x32xf32>
    %185 = arith.addf %182, %184 : vector<8x32xf32>
    %186 = arith.addf %160, %185 : vector<8x32xf32>
    %c0_112 = arith.constant 0 : index
    %c0_113 = arith.constant 0 : index
    %c0_114 = arith.constant 0 : index
    %187 = vector.load %arg19[%c0_112, %c0_113, %c0_114] : memref<1x8x32xf32, #tpu.memory_space<vmem>>, vector<1x8x32xf32>
    %188 = vector.shape_cast %187 : vector<1x8x32xf32> to vector<8x32xf32>
    %189 = vector.shape_cast %186 : vector<8x32xf32> to vector<1x8x32xf32>
    tpu.vector_store %arg19[%c0_112, %c0_113, %c0_114], %189 {strides = array<i32>} : memref<1x8x32xf32, #tpu.memory_space<vmem>>, vector<1x8x32xf32>,
    return
  }
  func.func @transform_0(%arg0: i32) -> (i32, i32, i32) {
    %c0_i32 = arith.constant 0 : i32
    %c0_i32_0 = arith.constant 0 : i32
    %c0_i32_1 = arith.constant 0 : i32
    return %arg0, %c0_i32, %c0_i32_0 : i32, i32, i32
  }
  func.func @transform_1(%arg0: i32) -> (i32, i32, i32) {
    %c0_i32 = arith.constant 0 : i32
    %c0_i32_0 = arith.constant 0 : i32
    %c0_i32_1 = arith.constant 0 : i32
    return %arg0, %c0_i32, %c0_i32_0 : i32, i32, i32
  }
  func.func @transform_2(%arg0: i32) -> (i32, i32) {
    %c0_i32 = arith.constant 0 : i32
    %c0_i32_0 = arith.constant 0 : i32
    %c0_i32_1 = arith.constant 0 : i32
    return %c0_i32, %c0_i32_0 : i32, i32
  }
  func.func @transform_3(%arg0: i32) -> (i32, i32) {
    %c0_i32 = arith.constant 0 : i32
    %c0_i32_0 = arith.constant 0 : i32
    %c0_i32_1 = arith.constant 0 : i32
    return %c0_i32, %c0_i32_0 : i32, i32
  }
  func.func @transform_4(%arg0: i32) -> (i32, i32) {
    %c0_i32 = arith.constant 0 : i32
    %c0_i32_0 = arith.constant 0 : i32
    %c0_i32_1 = arith.constant 0 : i32
    return %c0_i32, %c0_i32_0 : i32, i32
  }
  func.func @transform_5(%arg0: i32) -> (i32, i32) {
    %c0_i32 = arith.constant 0 : i32
    %c0_i32_0 = arith.constant 0 : i32
    %c0_i32_1 = arith.constant 0 : i32
    return %c0_i32, %c0_i32_0 : i32, i32
  }
  func.func @transform_6(%arg0: i32) -> (i32, i32, i32) {
    %c0_i32 = arith.constant 0 : i32
    %c0_i32_0 = arith.constant 0 : i32
    %c0_i32_1 = arith.constant 0 : i32
    %c0_i32_2 = arith.constant 0 : i32
    return %c0_i32, %c0_i32_0, %c0_i32_1 : i32, i32, i32
  }
  func.func @transform_7(%arg0: i32) -> (i32, i32, i32) {
    %c0_i32 = arith.constant 0 : i32
    %c0_i32_0 = arith.constant 0 : i32
    %c0_i32_1 = arith.constant 0 : i32
    %c0_i32_2 = arith.constant 0 : i32
    return %c0_i32, %c0_i32_0, %c0_i32_1 : i32, i32, i32
  }
  func.func @transform_8(%arg0: i32) -> (i32, i32, i32) {
    %c0_i32 = arith.constant 0 : i32
    %c0_i32_0 = arith.constant 0 : i32
    %c0_i32_1 = arith.constant 0 : i32
    %c0_i32_2 = arith.constant 0 : i32
    return %c0_i32, %c0_i32_0, %c0_i32_1 : i32, i32, i32
  }
  func.func @transform_9(%arg0: i32) -> (i32, i32, i32) {
    %c0_i32 = arith.constant 0 : i32
    %c0_i32_0 = arith.constant 0 : i32
    %c0_i32_1 = arith.constant 0 : i32
    %c0_i32_2 = arith.constant 0 : i32
    return %c0_i32, %c0_i32_0, %c0_i32_1 : i32, i32, i32
  }
  func.func @transform_10(%arg0: i32) -> (i32, i32, i32) {
    %c0_i32 = arith.constant 0 : i32
    %c0_i32_0 = arith.constant 0 : i32
    %c0_i32_1 = arith.constant 0 : i32
    %c0_i32_2 = arith.constant 0 : i32
    return %c0_i32, %c0_i32_0, %c0_i32_1 : i32, i32, i32
  }
  func.func @transform_11(%arg0: i32) -> (i32, i32, i32) {
    %c0_i32 = arith.constant 0 : i32
    %c0_i32_0 = arith.constant 0 : i32
    %c0_i32_1 = arith.constant 0 : i32
    %c0_i32_2 = arith.constant 0 : i32
    return %c0_i32, %c0_i32_0, %c0_i32_1 : i32, i32, i32
  }
  func.func @transform_12(%arg0: i32) -> (i32, i32, i32) {
    %c0_i32 = arith.constant 0 : i32
    %c0_i32_0 = arith.constant 0 : i32
    %c0_i32_1 = arith.constant 0 : i32
    %c0_i32_2 = arith.constant 0 : i32
    return %c0_i32, %c0_i32_0, %c0_i32_1 : i32, i32, i32
  }
  func.func @transform_13(%arg0: i32) -> (i32, i32) {
    %c0_i32 = arith.constant 0 : i32
    %c0_i32_0 = arith.constant 0 : i32
    %c0_i32_1 = arith.constant 0 : i32
    return %c0_i32, %c0_i32_0 : i32, i32
  }
  func.func @transform_14(%arg0: i32) -> (i32, i32) {
    %c0_i32 = arith.constant 0 : i32
    %c0_i32_0 = arith.constant 0 : i32
    %c0_i32_1 = arith.constant 0 : i32
    return %c0_i32, %c0_i32_0 : i32, i32
  }
  func.func @transform_15(%arg0: i32) -> (i32, i32) {
    %c0_i32 = arith.constant 0 : i32
    %c0_i32_0 = arith.constant 0 : i32
    %c0_i32_1 = arith.constant 0 : i32
    return %c0_i32, %c0_i32_0 : i32, i32
  }
  func.func @transform_16(%arg0: i32) -> (i32, i32) {
    %c0_i32 = arith.constant 0 : i32
    %c0_i32_0 = arith.constant 0 : i32
    %c0_i32_1 = arith.constant 0 : i32
    return %c0_i32, %c0_i32_0 : i32, i32
  }
  func.func @transform_17(%arg0: i32) -> (i32, i32) {
    %c0_i32 = arith.constant 0 : i32
    %c0_i32_0 = arith.constant 0 : i32
    %c0_i32_1 = arith.constant 0 : i32
    return %c0_i32, %c0_i32_0 : i32, i32
  }
  func.func @transform_18(%arg0: i32) -> (i32, i32, i32) {
    %c0_i32 = arith.constant 0 : i32
    %c0_i32_0 = arith.constant 0 : i32
    %c0_i32_1 = arith.constant 0 : i32
    return %arg0, %c0_i32, %c0_i32_0 : i32, i32, i32
  }
}

</mosaic_0001>

<bundles_post_ra>
// kernel: _encoder_impl.2
= control target key start
LH: loop header
LB: loop body
LE: loop exit
PB: predicated region body
PF: predicated region fallthrough
CT: control target
= control target key end

     0   :  { %s4943_s0 = inlined_call_operand.hbm [shape: f32[2,8,32], index: 0, kind: input, shape index: {}]   ;;  %s4944_s1 = inlined_call_operand.hbm [shape: f32[2,8,32], index: 1, kind: input, shape index: {}]   ;;  %s4945_s2 = inlined_call_operand.hbm [shape: f32[1,32], index: 2, kind: input, shape index: {}]   ;;  %s4946_s3 = inlined_call_operand.hbm [shape: f32[1,32], index: 3, kind: input, shape index: {}]   ;;  %s4947_s4 = inlined_call_operand.hbm [shape: f32[1,32], index: 4, kind: input, shape index: {}]   ;;  %s4948_s5 = inlined_call_operand.hbm [shape: f32[1,32], index: 5, kind: input, shape index: {}]   ;;  %s4949_s6 = inlined_call_operand.hbm [shape: bf16[4,32,8], index: 6, kind: input, shape index: {}]   ;;  %s4950_s7 = inlined_call_operand.hbm [shape: f32[4,1,8], index: 7, kind: input, shape index: {}]   ;;  %s4951_s8 = inlined_call_operand.hbm [shape: bf16[4,32,8], index: 8, kind: input, shape index: {}]   ;;  %s4952_s9 = inlined_call_operand.hbm [shape: f32[4,1,8], index: 9, kind: input, shape index: {}]   ;;  %s4953_s10 = inlined_call_operand.hbm [shape: bf16[4,32,8], index: 10, kind: input, shape index: {}]   ;;  %s4954_s11 = inlined_call_operand.hbm [shape: f32[4,1,8], index: 11, kind: input, shape index: {}]   ;;  %s4955_s12 = inlined_call_operand.hbm [shape: bf16[4,8,32], index: 12, kind: input, shape index: {}]   ;;  %s4956_s13 = inlined_call_operand.hbm [shape: f32[1,32], index: 13, kind: input, shape index: {}]   ;;  %s4957_s14 = inlined_call_operand.hbm [shape: bf16[32,64], index: 14, kind: input, shape index: {}]   ;;  %s4958_s15 = inlined_call_operand.hbm [shape: f32[1,64], index: 15, kind: input, shape index: {}]   ;;  %s4959_s16 = inlined_call_operand.hbm [shape: bf16[64,32], index: 16, kind: input, shape index: {}]   ;;  %s4960_s17 = inlined_call_operand.hbm [shape: f32[1,32], index: 17, kind: input, shape index: {}]   ;;  %s4961_s18 = inlined_call_operand.hbm [shape: f32[2,8,32], index: 18, kind: output, shape index: {}]  }
   0x1   :  { %4978 = sst [smem:[#allocation50_spill]] %s4943_s0 }
   0x2   :  { %4979 = sst [smem:[#allocation51_spill]] %s4944_s1 }
   0x3   :  { %4980 = sst [smem:[#allocation52_spill]] %s4945_s2 }
   0x4   :  { %4981 = sst [smem:[#allocation53_spill]] %s4946_s3 }
   0x5   :  { %4982 = sst [smem:[#allocation54_spill]] %s4947_s4 }
   0x6   :  { %4983 = sst [smem:[#allocation55_spill]] %s4948_s5 }
   0x7   :  { %4984 = sst [smem:[#allocation56_spill]] %s4949_s6 }
   0x8   :  { %4985 = sst [smem:[#allocation57_spill]] %s4950_s7 }
   0x9   :  { %4986 = sst [smem:[#allocation58_spill]] %s4951_s8 }
   0xa   :  { %4987 = sst [smem:[#allocation59_spill]] %s4952_s9 }
   0xb   :  { %4988 = sst [smem:[#allocation60_spill]] %s4953_s10 }
   0xc   :  { %4989 = sst [smem:[#allocation61_spill]] %s4954_s11 }
   0xd   :  { %4990 = sst [smem:[#allocation62_spill]] %s4961_s18 }
   0xe   :  { %23 = vsyncpa [#allocation3], 0 }
   0xf   :  { %25 = vsyncpa [#allocation3 + $0x1], 0 }
  0x10   :  { %26 = vsyncpa [#allocation6], 0 }
  0x11   :  { %28 = vsyncpa [#allocation6 + $0x1], 0 }
  0x12   :  { %29 = vsyncpa [#allocation9], 0 }
  0x13   :  { %30 = vsyncpa [#allocation12], 0 }
  0x14   :  { %31 = vsyncpa [#allocation15], 0 }
  0x15   :  { %32 = vsyncpa [#allocation18], 0 }
  0x16   :  { %33 = vsyncpa [#allocation21], 0 }
  0x17   :  { %34 = vsyncpa [#allocation24], 0 }
  0x18   :  { %35 = vsyncpa [#allocation27], 0 }
  0x19   :  { %36 = vsyncpa [#allocation30], 0 }
  0x1a   :  { %37 = vsyncpa [#allocation4], 0 }
  0x1b   :  { %39 = vsyncpa [#allocation4 + $0x1], 0  ;;  %s4132_s27 = smov 0   ;;  %s4134_s28 = smov 0  }
  0x1c   :  { %s4136_s29 = smov 0   ;;  %s4138_s30 = smov 0  }
  0x1d LB: > { %4991 = sst [smem:[#allocation44_spill]] %s3998_s27  ;;  %s4012_s0 = smov [#allocation7]   ;;  %s4010_s30 = sphi %s4138_s30, %s4565_s30   ;;  %s4006_s29 = sphi %s4136_s29, %s5054_s29   ;;  %s4002_s28 = sphi %s4134_s28, %s5053_s28   ;;  %s3998_s27 = sphi %s4132_s27, %s5052_s27  }
  0x1e   : > { %4992 = sst [smem:[#allocation45_spill]] %s4002_s28  ;;  %s477_s19 = sshll.u32 %s4012_s0, 4  ;;  %s4158_s19 = int_to_ptr.vmem [resolvable:$true] %s477_s19 }
  0x1f   : > { %4993 = sst [smem:[#allocation46_spill]] %s4006_s29  ;;  %s4153_s1 = sadd.s32 4294967295, %s4010_s30  }
  0x20   : > { %4994 = sst [smem:[#allocation47_spill]] %s4010_s30  ;;  %p2749_p0 = scmp.ge.s32.totalorder %s4010_s30, 1 }
  0x21   : > { %4995 = sst [smem:[#allocation48_spill]] %s4153_s1  ;;  %p4974_p1 = scmp.eq.s32.totalorder %s4153_s1, 0 }
  0x22   : > { %p464_p2 = scmp.lt.s32.totalorder %s4010_s30, 3  ;;  %s4013_s21 = smov [#allocation8]  }
  0x23   : > { %s488_s22 = sshll.u32 %s4013_s21, 4  ;;  %s4014_s2 = smov [#allocation11]   ;;  %s4167_s22 = int_to_ptr.vmem [resolvable:$true] %s488_s22 }
  0x24   : > { %p4160_p3 = pnand %p2749_p0, %p464_p2  ;;  %s510_s23 = sshll.u32 %s4014_s2, 4  ;;  %s4175_s23 = int_to_ptr.vmem [resolvable:$true] %s510_s23 }
  0x25   : > { %s4015_s25 = smov [#allocation14]  }
  0x26   : > { %s4996_s20 = scalar_select %p4160_p3, 1, 0 }
  0x27   : > { %p3196_p5 = pneg %p4160_p3  ;;  %s4177_s26 = sshll.u32 %s4015_s25, 4  ;;  %s534_s26 = int_to_ptr.vmem [resolvable:$true] %s4177_s26 }
  0x28   : > { %4997 = sst [smem:[#allocation49_spill]] %s4996_s20 }
  0x29   : > { %p4171_p6 = pnand %p3196_p5, %p4974_p1  ;;  %s4999_s20 = sld [smem:[#allocation52_spill]] }
  0x2b   : > { %p4187_p8 = pneg %p4171_p6 }
  0x2f   : > { %s3396_s27 = scalar_lea.hbm %s4999_s20, 16 }
  0x30   : > { %p3397_p7 = scmp.ne.s32.totalorder %s4999_s20, %s3396_s27  ;;  %p3403_p11 = scmp.lt.u32.totalorder %s3396_s27, %s4999_s20 }
  0x32   : > { %p3399_p9 = pnand %p4187_p8, %p3397_p7 }
  0x34   : > { %p3400_p10 = pneg %p3399_p9 }
  0x36   : > { %p3405_p12 = pnand %p3403_p11, %p3400_p10 }
  0x38   : > { %3408 = shalt.err (!%p3405_p12)
}
  0x39   : > { %s3409_s18 = scalar_lea.vmem %s4158_s19, 16  ;;  %s3416_s28 = scalar_lea.vmem %s4158_s19, 32 }
  0x3a   : > { %p3410_p13 = scmp.ne.s32.totalorder %s4158_s19, %s3409_s18  ;;  %p3417_p5 = scmp.lt.s32.totalorder %s4158_s19, %s4158_s19 }
  0x3b   : > { %p3418_p7 = scmp.lt.s32.totalorder %s3416_s28, %s3409_s18 }
  0x3c   : > { %p3412_p0 = pnand %p3410_p13, %p4187_p8 }
  0x3d   : > { %p3419_p9 = por %p3418_p7, %p3417_p5 }
  0x3e   : > { %p3413_p2 = pneg %p3412_p0 }
  0x40   : > { %p3420_p4 = pnand %p3419_p9, %p3413_p2 }
  0x42   : > { %3423 = shalt.err (!%p3420_p4)
}
  0x43   : > { %3199 = dma.hbm_to_vmem [thread:$0]  (!%p4171_p6), %s4999_s20, 16, %s4158_s19, [#allocation6]  }
  0x44   : > { %s5001_s3 = sld [smem:[#allocation53_spill]] }
  0x4a   : > { %s3424_s25 = scalar_lea.hbm %s5001_s3, 16 }
  0x4b   : > { %p3425_p10 = scmp.ne.s32.totalorder %s5001_s3, %s3424_s25  ;;  %p3431_p4 = scmp.lt.u32.totalorder %s3424_s25, %s5001_s3 }
  0x4d   : > { %p3427_p11 = pnand %p3425_p10, %p4187_p8 }
  0x4f   : > { %p3428_p12 = pneg %p3427_p11 }
  0x51   : > { %p3433_p13 = pnand %p3431_p4, %p3428_p12 }
  0x53   : > { %3436 = shalt.err (!%p3433_p13)
}
  0x54   : > { %s3437_s19 = scalar_lea.vmem %s4167_s22, 16  ;;  %s3444_s29 = scalar_lea.vmem %s4167_s22, 32 }
  0x55   : > { %p3438_p0 = scmp.ne.s32.totalorder %s4167_s22, %s3437_s19  ;;  %p3445_p7 = scmp.lt.s32.totalorder %s4167_s22, %s4167_s22 }
  0x56   : > { %p3446_p9 = scmp.lt.s32.totalorder %s3444_s29, %s3437_s19 }
  0x57   : > { %p3440_p2 = pnand %p3438_p0, %p4187_p8 }
  0x58   : > { %p3447_p10 = por %p3446_p9, %p3445_p7 }
  0x59   : > { %p3441_p5 = pneg %p3440_p2 }
  0x5b   : > { %p3448_p11 = pnand %p3447_p10, %p3441_p5 }
  0x5d   : > { %3451 = shalt.err (!%p3448_p11)
}
  0x5e   : > { %3202 = dma.hbm_to_vmem [thread:$0]  (!%p4171_p6), %s5001_s3, 16, %s4167_s22, [#allocation9]  }
  0x5f   : > { %s5002_s5 = sld [smem:[#allocation55_spill]] }
  0x65   : > { %s3452_s21 = scalar_lea.hbm %s5002_s5, 16 }
  0x66   : > { %p3453_p12 = scmp.ne.s32.totalorder %s5002_s5, %s3452_s21  ;;  %p3459_p0 = scmp.lt.u32.totalorder %s3452_s21, %s5002_s5 }
  0x68   : > { %p3455_p4 = pnand %p3453_p12, %p4187_p8 }
  0x6a   : > { %p3456_p13 = pneg %p3455_p4 }
  0x6c   : > { %p3461_p2 = pnand %p3459_p0, %p3456_p13 }
  0x6e   : > { %3464 = shalt.err (!%p3461_p2)
}
  0x6f   : > { %s3465_s22 = scalar_lea.vmem %s4175_s23, 16  ;;  %s3472_s29 = scalar_lea.vmem %s4175_s23, 32 }
  0x70   : > { %p3466_p5 = scmp.ne.s32.totalorder %s4175_s23, %s3465_s22  ;;  %p3473_p10 = scmp.lt.s32.totalorder %s4175_s23, %s4175_s23 }
  0x71   : > { %p3474_p11 = scmp.lt.s32.totalorder %s3472_s29, %s3465_s22 }
  0x72   : > { %p3468_p7 = pnand %p3466_p5, %p4187_p8 }
  0x73   : > { %p3475_p12 = por %p3474_p11, %p3473_p10 }
  0x74   : > { %p3469_p9 = pneg %p3468_p7 }
  0x76   : > { %p3476_p4 = pnand %p3475_p12, %p3469_p9 }
  0x78   : > { %3479 = shalt.err (!%p3476_p4)
}
  0x79   : > { %3208 = dma.hbm_to_vmem [thread:$0]  (!%p4171_p6), %s5002_s5, 16, %s4175_s23, [#allocation12]  }
  0x7a   : > { %s5003_s7 = sld [smem:[#allocation57_spill]] }
  0x80   : > { %s3480_s21 = scalar_lea.hbm %s5003_s7, 64 }
  0x81   : > { %p3481_p13 = scmp.ne.s32.totalorder %s5003_s7, %s3480_s21  ;;  %p3487_p5 = scmp.lt.u32.totalorder %s3480_s21, %s5003_s7 }
  0x83   : > { %p3483_p0 = pnand %p3481_p13, %p4187_p8 }
  0x85   : > { %p3484_p2 = pneg %p3483_p0 }
  0x87   : > { %p3489_p7 = pnand %p3487_p5, %p3484_p2 }
  0x89   : > { %3492 = shalt.err (!%p3489_p7)
}
  0x8a   : > { %s3493_s22 = scalar_lea.vmem %s534_s26, 64  ;;  %p3501_p12 = scmp.lt.s32.totalorder %s534_s26, %s534_s26 }
  0x8b   : > { %p3494_p9 = scmp.ne.s32.totalorder %s534_s26, %s3493_s22  ;;  %p3502_p4 = scmp.lt.s32.totalorder %s3493_s22, %s3493_s22 }
  0x8d   : > { %p3496_p10 = pnand %p3494_p9, %p4187_p8  ;;  %p3503_p1 = por %p3502_p4, %p3501_p12 }
  0x8f   : > { %p3497_p11 = pneg %p3496_p10 }
  0x91   : > { %p3504_p3 = pnand %p3503_p1, %p3497_p11 }
  0x93   : > { %3507 = shalt.err (!%p3504_p3)
}
  0x94   : > { %s4016_s23 = smov 16   ;;  %s4017_s29 = smov 1  }
  0x95   : > { %3214 = dma.hbm_to_vmem [thread:$0]  (!%p4171_p6), %s5003_s7, 64, %s534_s26, [#allocation15], %s4016_s23, %s4016_s23, %s4017_s29  }
  0x96   : > { %s4018_s1 = smov [#allocation17]   ;;  %s4019_s21 = smov [#allocation20]  }
  0x97   : > { %s559_s0 = sshll.u32 %s4018_s1, 4  ;;  %s585_s25 = sshll.u32 %s4019_s21, 4  ;;  %s560_s0 = int_to_ptr.vmem [resolvable:$true] %s559_s0  ;;  %s4279_s25 = int_to_ptr.vmem [resolvable:$true] %s585_s25 }
  0x98   : > { %s5004_s9 = sld [smem:[#allocation59_spill]] }
  0x9e   : > { %s3508_s19 = scalar_lea.hbm %s5004_s9, 64 }
  0x9f   : > { %p3509_p1 = scmp.ne.s32.totalorder %s5004_s9, %s3508_s19  ;;  %p3515_p0 = scmp.lt.u32.totalorder %s3508_s19, %s5004_s9 }
  0xa1   : > { %p3511_p3 = pnand %p3509_p1, %p4187_p8 }
  0xa3   : > { %p3512_p13 = pneg %p3511_p3 }
  0xa5   : > { %p3517_p2 = pnand %p3515_p0, %p3512_p13 }
  0xa7   : > { %3520 = shalt.err (!%p3517_p2)
}
  0xa8   : > { %s3521_s27 = scalar_lea.vmem %s560_s0, 64  ;;  %p3529_p10 = scmp.lt.s32.totalorder %s560_s0, %s560_s0 }
  0xa9   : > { %p3522_p5 = scmp.ne.s32.totalorder %s560_s0, %s3521_s27  ;;  %p3530_p11 = scmp.lt.s32.totalorder %s3521_s27, %s3521_s27 }
  0xab   : > { %p3524_p7 = pnand %p3522_p5, %p4187_p8  ;;  %p3531_p12 = por %p3530_p11, %p3529_p10 }
  0xad   : > { %p3525_p9 = pneg %p3524_p7 }
  0xaf   : > { %p3532_p4 = pnand %p3531_p12, %p3525_p9 }
  0xb1   : > { %3535 = shalt.err (!%p3532_p4)
}
  0xb2   : > { %3220 = dma.hbm_to_vmem [thread:$0]  (!%p4171_p6), %s5004_s9, 64, %s560_s0, [#allocation18], %s4016_s23, %s4016_s23, %s4017_s29  }
  0xb3   : > { %s5005_s11 = sld [smem:[#allocation61_spill]] }
  0xb9   : > { %s3536_s28 = scalar_lea.hbm %s5005_s11, 64 }
  0xba   : > { %p3537_p1 = scmp.ne.s32.totalorder %s5005_s11, %s3536_s28  ;;  %p3543_p0 = scmp.lt.u32.totalorder %s3536_s28, %s5005_s11 }
  0xbc   : > { %p3539_p3 = pnand %p3537_p1, %p4187_p8 }
  0xbe   : > { %p3540_p13 = pneg %p3539_p3 }
  0xc0   : > { %p3545_p2 = pnand %p3543_p0, %p3540_p13 }
  0xc2   : > { %3548 = shalt.err (!%p3545_p2)
}
  0xc3   : > { %s3549_s0 = scalar_lea.vmem %s4279_s25, 64  ;;  %p3557_p10 = scmp.lt.s32.totalorder %s4279_s25, %s4279_s25 }
  0xc4   : > { %p3550_p5 = scmp.ne.s32.totalorder %s4279_s25, %s3549_s0  ;;  %p3558_p11 = scmp.lt.s32.totalorder %s3549_s0, %s3549_s0 }
  0xc6   : > { %p3552_p7 = pnand %p3550_p5, %p4187_p8  ;;  %p3559_p12 = por %p3558_p11, %p3557_p10 }
  0xc8   : > { %p3553_p9 = pneg %p3552_p7 }
  0xca   : > { %p3560_p4 = pnand %p3559_p12, %p3553_p9 }
  0xcc   : > { %3563 = shalt.err (!%p3560_p4)
}
  0xcd   : > { %3226 = dma.hbm_to_vmem [thread:$0]  (!%p4171_p6), %s5005_s11, 64, %s4279_s25, [#allocation21], %s4016_s23, %s4016_s23, %s4017_s29  }
  0xce   : > { %s4020_s1 = smov [#allocation23]   ;;  %s4021_s18 = smov [#allocation26]  }
  0xcf   : > { %s612_s21 = sshll.u32 %s4020_s1, 4  ;;  %s636_s28 = sshll.u32 %s4021_s18, 4  ;;  %s613_s21 = int_to_ptr.vmem [resolvable:$true] %s612_s21  ;;  %s4328_s28 = int_to_ptr.vmem [resolvable:$true] %s636_s28 }
  0xd0   : > { %s3564_s30 = scalar_lea.hbm %s4956_s13, 16 }
  0xd1   : > { %p3565_p1 = scmp.ne.s32.totalorder %s4956_s13, %s3564_s30  ;;  %p3571_p0 = scmp.lt.u32.totalorder %s3564_s30, %s4956_s13 }
  0xd3   : > { %p3567_p3 = pnand %p3565_p1, %p4187_p8 }
  0xd5   : > { %p3568_p13 = pneg %p3567_p3 }
  0xd7   : > { %p3573_p2 = pnand %p3571_p0, %p3568_p13 }
  0xd9   : > { %3576 = shalt.err (!%p3573_p2)
}
  0xda   : > { %s3577_s29 = scalar_lea.vmem %s613_s21, 16  ;;  %s3584_s25 = scalar_lea.vmem %s613_s21, 32 }
  0xdb   : > { %p3578_p5 = scmp.ne.s32.totalorder %s613_s21, %s3577_s29  ;;  %p3585_p10 = scmp.lt.s32.totalorder %s613_s21, %s613_s21 }
  0xdc   : > { %p3586_p11 = scmp.lt.s32.totalorder %s3584_s25, %s3577_s29 }
  0xdd   : > { %p3580_p7 = pnand %p3578_p5, %p4187_p8 }
  0xde   : > { %p3587_p12 = por %p3586_p11, %p3585_p10 }
  0xdf   : > { %p3581_p9 = pneg %p3580_p7 }
  0xe1   : > { %p3588_p4 = pnand %p3587_p12, %p3581_p9 }
  0xe3   : > { %3591 = shalt.err (!%p3588_p4)
}
  0xe4   : > { %3232 = dma.hbm_to_vmem [thread:$0]  (!%p4171_p6), %s4956_s13, 16, %s613_s21, [#allocation24]  }
  0xe5   : > { %s3592_s22 = scalar_lea.hbm %s4958_s15, 16 }
  0xe6   : > { %p3593_p1 = scmp.ne.s32.totalorder %s4958_s15, %s3592_s22  ;;  %p3599_p0 = scmp.lt.u32.totalorder %s3592_s22, %s4958_s15 }
  0xe8   : > { %p3595_p3 = pnand %p3593_p1, %p4187_p8 }
  0xea   : > { %p3596_p13 = pneg %p3595_p3 }
  0xec   : > { %p3601_p2 = pnand %p3599_p0, %p3596_p13 }
  0xee   : > { %3604 = shalt.err (!%p3601_p2)
}
  0xef   : > { %s3605_s21 = scalar_lea.vmem %s4328_s28, 16  ;;  %s3612_s23 = scalar_lea.vmem %s4328_s28, 32 }
  0xf0   : > { %p3606_p5 = scmp.ne.s32.totalorder %s4328_s28, %s3605_s21  ;;  %p3613_p10 = scmp.lt.s32.totalorder %s4328_s28, %s4328_s28 }
  0xf1   : > { %p3614_p11 = scmp.lt.s32.totalorder %s3612_s23, %s3605_s21 }
  0xf2   : > { %p3608_p7 = pnand %p3606_p5, %p4187_p8 }
  0xf3   : > { %p3615_p12 = por %p3614_p11, %p3613_p10 }
  0xf4   : > { %p3609_p9 = pneg %p3608_p7 }
  0xf6   : > { %p3616_p4 = pnand %p3615_p12, %p3609_p9 }
  0xf8   : > { %3619 = shalt.err (!%p3616_p4)
}
  0xf9   : > { %3238 = dma.hbm_to_vmem [thread:$0]  (!%p4171_p6), %s4958_s15, 16, %s4328_s28, [#allocation27]  }
  0xfa   : > { %s4022_s3 = smov [#allocation10]   ;;  %s4023_s18 = smov [#allocation13]  }
  0xfb   : > { %s499_s1 = sshll.u32 %s4022_s3, 4  ;;  %s520_s19 = sshll.u32 %s4023_s18, 4  ;;  %s500_s1 = int_to_ptr.vmem [resolvable:$true] %s499_s1  ;;  %s4372_s19 = int_to_ptr.vmem [resolvable:$true] %s520_s19 }
  0xfc   : > { %s5006_s4 = sld [smem:[#allocation54_spill]] }
 0x102   : > { %s3620_s26 = scalar_lea.hbm %s5006_s4, 16 }
 0x103   : > { %p3621_p1 = scmp.ne.s32.totalorder %s5006_s4, %s3620_s26  ;;  %p3627_p0 = scmp.lt.u32.totalorder %s3620_s26, %s5006_s4 }
 0x105   : > { %p3623_p3 = pnand %p3621_p1, %p4187_p8 }
 0x107   : > { %p3624_p13 = pneg %p3623_p3 }
 0x109   : > { %p3629_p2 = pnand %p3627_p0, %p3624_p13 }
 0x10b   : > { %3632 = shalt.err (!%p3629_p2)
}
 0x10c   : > { %s3633_s23 = scalar_lea.vmem %s500_s1, 16  ;;  %s3640_s29 = scalar_lea.vmem %s500_s1, 32 }
 0x10d   : > { %p3634_p5 = scmp.ne.s32.totalorder %s500_s1, %s3633_s23  ;;  %p3641_p10 = scmp.lt.s32.totalorder %s500_s1, %s500_s1 }
 0x10e   : > { %p3642_p11 = scmp.lt.s32.totalorder %s3640_s29, %s3633_s23 }
 0x10f   : > { %p3636_p7 = pnand %p3634_p5, %p4187_p8 }
 0x110   : > { %p3643_p12 = por %p3642_p11, %p3641_p10 }
 0x111   : > { %p3637_p9 = pneg %p3636_p7 }
 0x113   : > { %p3644_p4 = pnand %p3643_p12, %p3637_p9 }
 0x115   : > { %3647 = shalt.err (!%p3644_p4)
}
 0x116   : > { %3205 = dma.hbm_to_vmem [thread:$0]  (!%p4171_p6), %s5006_s4, 16, %s500_s1, [#allocation9]  }
 0x117   : > { %s5007_s6 = sld [smem:[#allocation56_spill]] }
 0x11d   : > { %s3648_s30 = scalar_lea.hbm %s5007_s6, 1024 }
 0x11e   : > { %p3649_p1 = scmp.ne.s32.totalorder %s5007_s6, %s3648_s30  ;;  %p3655_p0 = scmp.lt.u32.totalorder %s3648_s30, %s5007_s6 }
 0x120   : > { %p3651_p3 = pnand %p3649_p1, %p4187_p8 }
 0x122   : > { %p3652_p13 = pneg %p3651_p3 }
 0x124   : > { %p3657_p2 = pnand %p3655_p0, %p3652_p13 }
 0x126   : > { %3660 = shalt.err (!%p3657_p2)
}
 0x127   : > { %s3661_s1 = scalar_lea.vmem %s4372_s19, 1024  ;;  %p3669_p10 = scmp.lt.s32.totalorder %s4372_s19, %s4372_s19 }
 0x128   : > { %p3662_p5 = scmp.ne.s32.totalorder %s4372_s19, %s3661_s1  ;;  %p3670_p11 = scmp.lt.s32.totalorder %s3661_s1, %s3661_s1 }
 0x12a   : > { %p3664_p7 = pnand %p3662_p5, %p4187_p8  ;;  %p3671_p12 = por %p3670_p11, %p3669_p10 }
 0x12c   : > { %p3665_p9 = pneg %p3664_p7 }
 0x12e   : > { %p3672_p4 = pnand %p3671_p12, %p3665_p9 }
 0x130   : > { %3675 = shalt.err (!%p3672_p4)
}
 0x131   : > { %s4024_s28 = smov 64   ;;  %s4025_s23 = smov 4  }
 0x132   : > { %3211 = dma.hbm_to_vmem [thread:$0]  (!%p4171_p6), %s5007_s6, 1024, %s4372_s19, [#allocation12], %s4024_s28, %s4024_s28, %s4025_s23  }
 0x133   : > { %s4026_s3 = smov [#allocation16]   ;;  %s4027_s22 = smov [#allocation19]  }
 0x134   : > { %s546_s18 = sshll.u32 %s4026_s3, 4  ;;  %s572_s30 = sshll.u32 %s4027_s22, 4  ;;  %s547_s18 = int_to_ptr.vmem [resolvable:$true] %s546_s18  ;;  %s4418_s30 = int_to_ptr.vmem [resolvable:$true] %s572_s30 }
 0x135   : > { %s5008_s8 = sld [smem:[#allocation58_spill]] }
 0x13b   : > { %s3676_s27 = scalar_lea.hbm %s5008_s8, 1024 }
 0x13c   : > { %p3677_p1 = scmp.ne.s32.totalorder %s5008_s8, %s3676_s27  ;;  %p3683_p0 = scmp.lt.u32.totalorder %s3676_s27, %s5008_s8 }
 0x13e   : > { %p3679_p3 = pnand %p3677_p1, %p4187_p8 }
 0x140   : > { %p3680_p13 = pneg %p3679_p3 }
 0x142   : > { %p3685_p2 = pnand %p3683_p0, %p3680_p13 }
 0x144   : > { %3688 = shalt.err (!%p3685_p2)
}
 0x145   : > { %s3689_s25 = scalar_lea.vmem %s547_s18, 1024  ;;  %p3697_p10 = scmp.lt.s32.totalorder %s547_s18, %s547_s18 }
 0x146   : > { %p3690_p5 = scmp.ne.s32.totalorder %s547_s18, %s3689_s25  ;;  %p3698_p11 = scmp.lt.s32.totalorder %s3689_s25, %s3689_s25 }
 0x148   : > { %p3692_p7 = pnand %p3690_p5, %p4187_p8  ;;  %p3699_p12 = por %p3698_p11, %p3697_p10 }
 0x14a   : > { %p3693_p9 = pneg %p3692_p7 }
 0x14c   : > { %p3700_p4 = pnand %p3699_p12, %p3693_p9 }
 0x14e   : > { %3703 = shalt.err (!%p3700_p4)
}
 0x14f   : > { %3217 = dma.hbm_to_vmem [thread:$0]  (!%p4171_p6), %s5008_s8, 1024, %s547_s18, [#allocation15], %s4024_s28, %s4024_s28, %s4025_s23  }
 0x150   : > { %s5009_s10 = sld [smem:[#allocation60_spill]] }
 0x156   : > { %s3704_s27 = scalar_lea.hbm %s5009_s10, 1024 }
 0x157   : > { %p3705_p1 = scmp.ne.s32.totalorder %s5009_s10, %s3704_s27  ;;  %p3711_p0 = scmp.lt.u32.totalorder %s3704_s27, %s5009_s10 }
 0x159   : > { %p3707_p3 = pnand %p3705_p1, %p4187_p8 }
 0x15b   : > { %p3708_p13 = pneg %p3707_p3 }
 0x15d   : > { %p3713_p2 = pnand %p3711_p0, %p3708_p13 }
 0x15f   : > { %3716 = shalt.err (!%p3713_p2)
}
 0x160   : > { %s3717_s18 = scalar_lea.vmem %s4418_s30, 1024  ;;  %p3725_p10 = scmp.lt.s32.totalorder %s4418_s30, %s4418_s30 }
 0x161   : > { %p3718_p5 = scmp.ne.s32.totalorder %s4418_s30, %s3717_s18  ;;  %p3726_p11 = scmp.lt.s32.totalorder %s3717_s18, %s3717_s18 }
 0x163   : > { %p3720_p7 = pnand %p3718_p5, %p4187_p8  ;;  %p3727_p12 = por %p3726_p11, %p3725_p10 }
 0x165   : > { %p3721_p9 = pneg %p3720_p7 }
 0x167   : > { %p3728_p4 = pnand %p3727_p12, %p3721_p9 }
 0x169   : > { %3731 = shalt.err (!%p3728_p4)
}
 0x16a   : > { %3223 = dma.hbm_to_vmem [thread:$0]  (!%p4171_p6), %s5009_s10, 1024, %s4418_s30, [#allocation18], %s4024_s28, %s4024_s28, %s4025_s23  }
 0x16b   : > { %s4028_s22 = smov [#allocation22]   ;;  %s4029_s0 = smov [#allocation25]  }
 0x16c   : > { %s598_s26 = sshll.u32 %s4028_s22, 4  ;;  %s622_s27 = sshll.u32 %s4029_s0, 4  ;;  %s599_s26 = int_to_ptr.vmem [resolvable:$true] %s598_s26  ;;  %s4467_s27 = int_to_ptr.vmem [resolvable:$true] %s622_s27 }
 0x16d   : > { %s3732_s29 = scalar_lea.hbm %s4955_s12, 256 }
 0x16e   : > { %p3733_p1 = scmp.ne.s32.totalorder %s4955_s12, %s3732_s29  ;;  %p3739_p0 = scmp.lt.u32.totalorder %s3732_s29, %s4955_s12 }
 0x170   : > { %p3735_p3 = pnand %p3733_p1, %p4187_p8 }
 0x172   : > { %p3736_p13 = pneg %p3735_p3 }
 0x174   : > { %p3741_p2 = pnand %p3739_p0, %p3736_p13 }
 0x176   : > { %3744 = shalt.err (!%p3741_p2)
}
 0x177   : > { %s3745_s3 = scalar_lea.vmem %s599_s26, 256  ;;  %p3753_p10 = scmp.lt.s32.totalorder %s599_s26, %s599_s26 }
 0x178   : > { %p3746_p5 = scmp.ne.s32.totalorder %s599_s26, %s3745_s3  ;;  %p3754_p11 = scmp.lt.s32.totalorder %s3745_s3, %s3745_s3 }
 0x17a   : > { %p3748_p7 = pnand %p3746_p5, %p4187_p8  ;;  %p3755_p12 = por %p3754_p11, %p3753_p10 }
 0x17c   : > { %p3749_p9 = pneg %p3748_p7 }
 0x17e   : > { %p3756_p4 = pnand %p3755_p12, %p3749_p9 }
 0x180   : > { %3759 = shalt.err (!%p3756_p4)
}
 0x181   : > { %3229 = dma.hbm_to_vmem [thread:$0]  (!%p4171_p6), %s4955_s12, 256, %s599_s26, [#allocation21], %s4024_s28, %s4024_s28, %s4025_s23  }
 0x182   : > { %s3760_s29 = scalar_lea.hbm %s4957_s14, 256 }
 0x183   : > { %p3761_p1 = scmp.ne.s32.totalorder %s4957_s14, %s3760_s29  ;;  %p3767_p0 = scmp.lt.u32.totalorder %s3760_s29, %s4957_s14 }
 0x185   : > { %p3763_p3 = pnand %p3761_p1, %p4187_p8 }
 0x187   : > { %p3764_p13 = pneg %p3763_p3 }
 0x189   : > { %p3769_p2 = pnand %p3767_p0, %p3764_p13 }
 0x18b   : > { %3772 = shalt.err (!%p3769_p2)
}
 0x18c   : > { %s3773_s26 = scalar_lea.vmem %s4467_s27, 256  ;;  %p3781_p10 = scmp.lt.s32.totalorder %s4467_s27, %s4467_s27 }
 0x18d   : > { %p3774_p5 = scmp.ne.s32.totalorder %s4467_s27, %s3773_s26  ;;  %p3782_p11 = scmp.lt.s32.totalorder %s3773_s26, %s3773_s26 }
 0x18f   : > { %p3776_p7 = pnand %p3774_p5, %p4187_p8  ;;  %p3783_p12 = por %p3782_p11, %p3781_p10 }
 0x191   : > { %p3777_p9 = pneg %p3776_p7 }
 0x193   : > { %p3784_p4 = pnand %p3783_p12, %p3777_p9 }
 0x195   : > { %3787 = shalt.err (!%p3784_p4)
}
 0x196   : > { %3235 = dma.hbm_to_vmem [thread:$0]  (!%p4171_p6), %s4957_s14, 256, %s4467_s27, [#allocation24], %s4024_s28, %s4024_s28, %s4025_s23  }
 0x197   : > { %s4030_s0 = smov [#allocation28]   ;;  %s4031_s1 = smov [#allocation29]  }
 0x198   : > { %s646_s21 = sshll.u32 %s4030_s0, 4  ;;  %s660_s29 = sshll.u32 %s4031_s1, 4  ;;  %s647_s21 = int_to_ptr.vmem [resolvable:$true] %s646_s21  ;;  %s4516_s29 = int_to_ptr.vmem [resolvable:$true] %s660_s29 }
 0x199   : > { %s3788_s25 = scalar_lea.hbm %s4959_s16, 512 }
 0x19a   : > { %p3789_p1 = scmp.ne.s32.totalorder %s4959_s16, %s3788_s25  ;;  %p3795_p0 = scmp.lt.u32.totalorder %s3788_s25, %s4959_s16 }
 0x19c   : > { %p3791_p3 = pnand %p3789_p1, %p4187_p8 }
 0x19e   : > { %p3792_p13 = pneg %p3791_p3 }
 0x1a0   : > { %p3797_p2 = pnand %p3795_p0, %p3792_p13 }
 0x1a2   : > { %3800 = shalt.err (!%p3797_p2)
}
 0x1a3   : > { %s3801_s22 = scalar_lea.vmem %s647_s21, 512  ;;  %p3809_p10 = scmp.lt.s32.totalorder %s647_s21, %s647_s21 }
 0x1a4   : > { %p3802_p5 = scmp.ne.s32.totalorder %s647_s21, %s3801_s22  ;;  %p3810_p11 = scmp.lt.s32.totalorder %s3801_s22, %s3801_s22 }
 0x1a6   : > { %p3804_p7 = pnand %p3802_p5, %p4187_p8  ;;  %p3811_p12 = por %p3810_p11, %p3809_p10 }
 0x1a8   : > { %p3805_p9 = pneg %p3804_p7 }
 0x1aa   : > { %p3812_p4 = pnand %p3811_p12, %p3805_p9 }
 0x1ac   : > { %3815 = shalt.err (!%p3812_p4)
}
 0x1ad   : > { %3241 = dma.hbm_to_vmem [thread:$0]  (!%p4171_p6), %s4959_s16, 512, %s647_s21, [#allocation27], %s4024_s28, %s4024_s28, %s4025_s23  }
 0x1ae   : > { %s3816_s25 = scalar_lea.hbm %s4960_s17, 16 }
 0x1af   : > { %p3817_p1 = scmp.ne.s32.totalorder %s4960_s17, %s3816_s25  ;;  %p3823_p0 = scmp.lt.u32.totalorder %s3816_s25, %s4960_s17 }
 0x1b1   : > { %p3819_p3 = pnand %p3817_p1, %p4187_p8 }
 0x1b3   : > { %p3820_p13 = pneg %p3819_p3 }
 0x1b5   : > { %p3825_p2 = pnand %p3823_p0, %p3820_p13 }
 0x1b7   : > { %3828 = shalt.err (!%p3825_p2)
}
 0x1b8   : > { %s3829_s28 = scalar_lea.vmem %s4516_s29, 16  ;;  %s3836_s23 = scalar_lea.vmem %s4516_s29, 32 }
 0x1b9   : > { %p3830_p5 = scmp.ne.s32.totalorder %s4516_s29, %s3829_s28  ;;  %p3837_p10 = scmp.lt.s32.totalorder %s4516_s29, %s4516_s29 }
 0x1ba   : > { %p3838_p11 = scmp.lt.s32.totalorder %s3836_s23, %s3829_s28 }
 0x1bb   : > { %p3832_p7 = pnand %p3830_p5, %p4187_p8 }
 0x1bc   : > { %p3839_p12 = por %p3838_p11, %p3837_p10 }
 0x1bd   : > { %p3833_p9 = pneg %p3832_p7 }
 0x1bf   : > { %p3840_p4 = pnand %p3839_p12, %p3833_p9 }
 0x1c1   : > { %3843 = shalt.err (!%p3840_p4)
}
 0x1c2   : > { %s5010_s0 = sld [smem:[#allocation47_spill]]  ;;  %s5011_s1 = sld [smem:[#allocation46_spill]] }
 0x1c3   : > { %s5012_s2 = sld [smem:[#allocation45_spill]]  ;;  %s5013_s19 = sld [smem:[#allocation44_spill]] }
 0x1c4   : > { %s5014_s18 = sld [smem:[#allocation48_spill]] }
 0x1c5   : > { %3244 = dma.hbm_to_vmem [thread:$0]  (!%p4171_p6), %s4960_s17, 16, %s4516_s29, [#allocation30]  }
 0x1c6   : > { %s5022_s7 = sld [smem:[#allocation51_spill]] }
 0x1c8   : > { %s2748_s24 = sadd.s32 4294967294, %s5010_s0   ;;  %s4565_s30 = sadd.s32 1, %s5010_s0  }
 0x1c9   : > { %s49_s25 = ssub.s32 %s5010_s0, %s4565_s30  ;;  %s52_s26 = sadd.s32 1, %s5011_s1 }
 0x1ca   : > { %p50_p8 = scmp.eq.s32.totalorder %s49_s25, 0  ;;  %p59_p1 = scmp.ne.s32.totalorder %s5011_s1, %s5012_s2 }
 0x1cb   : > { %p60_p3 = scmp.eq.s32.totalorder %s5010_s0, 0  ;;  %p65_p13 = scmp.ne.s32.totalorder %s5012_s2, %s5013_s19 }
 0x1cc   : > { %s4576_s3 = scalar_select %p50_p8, %s5011_s1, %s52_s26  }
 0x1cd   : > { %p4578_p0 = por %p60_p3, %p59_p1  ;;  %p5016_p2 = scmp.eq.s32.totalorder %s5014_s18, 0 }
 0x1ce   : > { %p451_p5 = scmp.eq.s32.totalorder %s5014_s18, 1  ;;  %p457_p7 = scmp.eq.s32.totalorder %s2748_s24, 1 }
 0x1cf   : > { %p4584_p6 = por %p5016_p2, %p65_p13  ;;  %p3272_p9 = scmp.lt.s32.totalorder %s5010_s0, 2 }
 0x1d0   : > { %s671_s28 = sand.u32 1, %s5011_s1   ;;  %p4591_p10 = por %p451_p5, %p59_p1 }
 0x1d1   : > { %s5017_s29 = scalar_select %p4584_p6, 1, 0 }
 0x1d2   : > { %s5018_s23 = scalar_select %p4591_p10, 1, 0 }
 0x1d3   : > { %p4595_p11 = por %p457_p7, %p65_p13  ;;  %s4599_s22 = sshll.u32 %s671_s28, 3 }
 0x1d4   : > { %s2768_s2 = sshll.u32 %s5010_s0, 7  ;;  %s5020_s26 = sld [smem:[#allocation50_spill]] }
 0x1d5   : > { %s5019_s21 = scalar_select %p4595_p11, 1, 0 }
 0x1d6   : > { %s675_s1 = scalar_lea.vmem [#allocation2], %s4599_s22  ;;  %p4612_p12 = pnand %p3272_p9, %p4578_p0 }
 0x1d7   : > { %s682_s18 = sshll.u32 %s675_s1, 4  ;;  %s4619_s19 = scalar_lea.hbm %s5022_s7, %s2768_s2  ;;  %s4608_s18 = int_to_ptr.vmem [resolvable:$true] %s682_s18 }
 0x1d8   : > { %s689_s25 = sand.u32 1, %s5010_s0   ;;  %s672_s8 = scalar_lea.sflag [#allocation3], %s671_s28 }
 0x1d9   : > { %p3846_p8 = pneg %p4612_p12 }
 0x1da   : > { %s4605_s4 = scalar_lea.hbm %s5020_s26, %s2768_s2  ;;  %s3849_s10 = scalar_lea.hbm %s5020_s26, 256 }
 0x1db   : > { %s3844_s9 = scalar_lea.hbm %s4605_s4, 128  ;;  %p3850_p13 = scmp.lt.u32.totalorder %s4605_s4, %s5020_s26 }
 0x1dc   : > { %p3845_p4 = scmp.ne.s32.totalorder %s4605_s4, %s3844_s9  ;;  %p3851_p0 = scmp.lt.u32.totalorder %s3849_s10, %s3844_s9 }
 0x1dd   : > { %p3853_p5 = scmp.lt.u32.totalorder %s3844_s9, %s4605_s4 }
 0x1de   : > { %p3847_p1 = pnand %p3846_p8, %p3845_p4  ;;  %p3852_p2 = por %p3851_p0, %p3850_p13 }
 0x1e0   : > { %p3848_p3 = pneg %p3847_p1  ;;  %p3854_p7 = por %p3853_p5, %p3852_p2 }
 0x1e2   : > { %p3855_p9 = pnand %p3854_p7, %p3848_p3 }
 0x1e4   : > { %3858 = shalt.err (!%p3855_p9)
}
 0x1e5   : > { %s3859_s6 = scalar_lea.vmem %s4608_s18, 128  ;;  %s4032_s28 = smov [#allocation2]  }
 0x1e6   : > { %p3860_p4 = scmp.ne.s32.totalorder %s4608_s18, %s3859_s6  ;;  %s3864_s2 = sshll.u32 %s4032_s28, 4  ;;  %s3865_s2 = int_to_ptr.vmem [resolvable:$false] %s3864_s2 }
 0x1e7   : > { %s3866_s11 = scalar_lea.vmem %s3865_s2, 256  ;;  %p3867_p10 = scmp.lt.s32.totalorder %s4608_s18, %s3865_s2 }
 0x1e8   : > { %p3862_p1 = pnand %p3860_p4, %p3846_p8  ;;  %p3868_p13 = scmp.lt.s32.totalorder %s3866_s11, %s3859_s6 }
 0x1ea   : > { %p3863_p11 = pneg %p3862_p1  ;;  %p3869_p0 = por %p3868_p13, %p3867_p10 }
 0x1ec   : > { %p3870_p2 = pnand %p3869_p0, %p3863_p11 }
 0x1ee   : > { %3873 = shalt.err (!%p3870_p2)
}
 0x1ef   : > { %3248 = dma.hbm_to_vmem [thread:$0]  (!%p4612_p12), %s4605_s4, 128, %s4608_s18, %s672_s8  }
 0x1f0   : > { %s693_s9 = scalar_lea.vmem [#allocation5], %s4599_s22  ;;  %s690_s27 = scalar_lea.sflag [#allocation6], %s689_s25 }
 0x1f1   : > { %s700_s10 = sshll.u32 %s693_s9, 4  ;;  %s3874_s1 = scalar_lea.hbm %s4619_s19, 128  ;;  %s701_s10 = int_to_ptr.vmem [resolvable:$true] %s700_s10 }
 0x1f2   : > { %p3875_p10 = scmp.ne.s32.totalorder %s4619_s19, %s3874_s1  ;;  %s3879_s28 = scalar_lea.hbm %s5022_s7, 256 }
 0x1f3   : > { %p3880_p5 = scmp.lt.u32.totalorder %s4619_s19, %s5022_s7  ;;  %p3881_p7 = scmp.lt.u32.totalorder %s3879_s28, %s3874_s1 }
 0x1f4   : > { %p3877_p11 = pnand %p3875_p10, %p3846_p8  ;;  %p3883_p4 = scmp.lt.u32.totalorder %s3874_s1, %s4619_s19 }
 0x1f5   : > { %p3882_p9 = por %p3881_p7, %p3880_p5 }
 0x1f6   : > { %p3878_p3 = pneg %p3877_p11 }
 0x1f7   : > { %p3884_p1 = por %p3883_p4, %p3882_p9 }
 0x1f9   : > { %p3885_p13 = pnand %p3884_p1, %p3878_p3 }
 0x1fb   : > { %3888 = shalt.err (!%p3885_p13)
}
 0x1fc   : > { %s3889_s4 = scalar_lea.vmem %s701_s10, 128  ;;  %s4033_s8 = smov [#allocation5]  }
 0x1fd   : > { %p3890_p0 = scmp.ne.s32.totalorder %s701_s10, %s3889_s4  ;;  %s3894_s0 = sshll.u32 %s4033_s8, 4  ;;  %s3895_s0 = int_to_ptr.vmem [resolvable:$false] %s3894_s0 }
 0x1fe   : > { %s3896_s22 = scalar_lea.vmem %s3895_s0, 256  ;;  %p3897_p11 = scmp.lt.s32.totalorder %s701_s10, %s3895_s0 }
 0x1ff   : > { %p3892_p2 = pnand %p3890_p0, %p3846_p8  ;;  %p3898_p6 = scmp.lt.s32.totalorder %s3896_s22, %s3889_s4 }
 0x201   : > { %p3893_p10 = pneg %p3892_p2  ;;  %p3899_p5 = por %p3898_p6, %p3897_p11 }
 0x203   : > { %p3900_p7 = pnand %p3899_p5, %p3893_p10 }
 0x205   : > { %3903 = shalt.err (!%p3900_p7)
}
 0x206   : > { %3251 = dma.hbm_to_vmem [thread:$0]  (!%p4612_p12), %s4619_s19, 128, %s701_s10, %s690_s27  }
 0x207   : > { %s5023_s18 = sld [smem:[#allocation49_spill]] }
 0x20d   : > { %p5024_p3 = scmp.ne.s32.totalorder %s5023_s18, 0 }
 0x20e   : > { %s5025_s25 = sld [smem:[#allocation45_spill]] (!%p5024_p3)  ;;  %p5026_p6 = scmp.ne.s32.totalorder (!%p5024_p3), %s5017_s29, 0 }
 0x20f   : > { %709 = sbr.rel (%p5024_p3) target bundleno = 2893 (0xb4d), region = 92 }
 0x214   : > { %s4672_s9 = sand.u32 (!%p5024_p3), 1, %s5025_s25  }
 0x215   : > { %s4675_s1 = sshll.u32 (!%p5024_p3), %s4672_s9, 3  ;;  %s712_s5 = scalar_lea.sflag (!%p5024_p3), [#allocation3], %s4672_s9 }
 0x216   : > { %s715_s6 = scalar_lea.vmem [#allocation2], %s4675_s1 }
 0x217   : > { %3949 = dma.done.wait (%p5026_p6), %s712_s5, 128  }
 0x218   : > { %3951 = vsyncadd (%p5026_p6), %s712_s5, 4294967168  ;;  %s5027_s24 = sld [smem:[#allocation48_spill]]  ;;  %s724_s27 = scalar_lea.vmem [#allocation5], %s4675_s1 }
 0x21e   : > { %s720_s19 = sand.u32 1, %s5027_s24  }
 0x21f   : > { %s721_s10 = scalar_lea.sflag [#allocation6], %s720_s19 }
 0x220   : > { %3953 = dma.done.wait (%p5026_p6), %s721_s10, 128  }
 0x221   : > { %3955 = vsyncadd (%p5026_p6), %s721_s10, 4294967168  ;;  %p5028_p12 = scmp.eq.s32.totalorder %s5027_s24, 0 }
 0x223   : > { %3957 = dma.done.wait (%p5028_p12), [#allocation6], 16   ;;  %p5029_p8 = pmov %p5028_p12 }
 0x225   : > { %3959 = vsyncadd (%p5029_p8), [#allocation6], 4294967280  ;;  %p5030_p9 = pmov %p5029_p8 }
 0x226   : > { %p5031_p4 = pmov %p5029_p8 }
 0x227   : > { %3961 = dma.done.wait (%p5030_p9), [#allocation9], 32  }
 0x228   : > { %3963 = vsyncadd (%p5031_p4), [#allocation9], 4294967264  ;;  %p5032_p1 = pmov %p5031_p4 }
 0x22a   : > { %3965 = dma.done.wait (%p5032_p1), [#allocation12], 1040   ;;  %p5033_p13 = pmov %p5032_p1 }
 0x22b   : > { %p5034_p0 = pmov %p5032_p1 }
 0x22c   : > { %3967 = vsyncadd (%p5033_p13), [#allocation12], 4294966256 }
 0x22d   : > { %3969 = dma.done.wait (%p5034_p0), [#allocation15], 1088   ;;  %p5035_p2 = pmov %p5034_p0 }
 0x22e   : > { %p5036_p10 = pmov %p5034_p0 }
 0x22f   : > { %3971 = vsyncadd (%p5035_p2), [#allocation15], 4294966208 }
 0x230   : > { %3973 = dma.done.wait (%p5036_p10), [#allocation18], 1088   ;;  %p5037_p11 = pmov %p5034_p0 }
 0x231   : > { %p5038_p5 = pmov %p5034_p0 }
 0x232   : > { %3975 = vsyncadd (%p5037_p11), [#allocation18], 4294966208 }
 0x233   : > { %3977 = dma.done.wait (%p5038_p5), [#allocation21], 320   ;;  %p5039_p7 = pmov %p5034_p0 }
 0x234   : > { %p5040_p3 = pmov %p5034_p0 }
 0x235   : > { %3979 = vsyncadd (%p5039_p7), [#allocation21], 4294966976 }
 0x236   : > { %3981 = dma.done.wait (%p5040_p3), [#allocation24], 272   ;;  %p5041_p6 = pmov %p5034_p0 }
 0x237   : > { %p5042_p12 = pmov %p5034_p0 }
 0x238   : > { %3983 = vsyncadd (%p5041_p6), [#allocation24], 4294967024 }
 0x239   : > { %3985 = dma.done.wait (%p5042_p12), [#allocation27], 528   ;;  %p5043_p8 = pmov %p5034_p0 }
 0x23a   : > { %p5044_p9 = pmov %p5034_p0 }
 0x23b   : > { %3987 = vsyncadd (%p5043_p8), [#allocation27], 4294966768 }
 0x23c   : > { %3989 = dma.done.wait (%p5044_p9), [#allocation30], 16   ;;  %p5045_p4 = pmov %p5034_p0 }
 0x23d   : > { %v847_v0 = vld [vmem:[%s715_s6] sm:$0xff]  ;;  %v848_v1 = vld [vmem:[%s724_s27] sm:$0xff]  ;;  %vm852_vm0 = vcmask 261120   ;;  %v4034_v11 = vmov 0.0   ;;  %vm4035_vm1 = vmmov 0   ;;  %vm1670_vm2 = vcmask 64512  }
 0x23e   : > { %3991 = vsyncadd (%p5045_p4), [#allocation30], 4294967280  ;;  %v849_v2 = vadd.f32 %v848_v1, %v847_v0  ;;  %v3344_v9 = vld [vmem:[#allocation13] sm:$0xff]   ;;  %v3345_v10 = vld [vmem:[#allocation13 + $0x10] sm:$0xff]   ;;  %2938 = vmatprep.subr.bf16.mxu0 %v4034_v11  ;;  %2946 = vmatprep.subr.bf16.mxu1 %v4034_v11  ;;  %vm1910_vm3 = vcmask 1043456   ;;  %vm2443_vm4 = vcmask 523264  }
 0x23f   : > { %2939 = vmatpush3.bf16.msra.mxu0 %v3344_v9  ;;  %2947 = vmatpush3.bf16.msra.mxu1 %v3345_v10  ;;  %v3346_v12 = vld [vmem:[#allocation13 + $0x8] sm:$0xff]   ;;  %v3347_v13 = vld [vmem:[#allocation13 + $0x18] sm:$0xff]   ;;  %v3348_v23 = vld [vmem:[#allocation13 + $0x20] sm:$0xff]   ;;  %s2867_s29 = sshll.u32 %s5027_s24, 7  ;;  %s845_s28 = scalar_lea.vmem [#allocation31], %s4675_s1 }
 0x240   : > { %v853_v3 = vsel %vm852_vm0, %v849_v2, 0.0  ;;  %2940 = vmatprep.subr.bf16.mxu0 %v4034_v11  ;;  %2948 = vmatprep.subr.bf16.mxu1 %v4034_v11  ;;  %v2791_v18 = vld [vmem:[#allocation7] ss:$0 sm:$0xff]  ;;  %v2792_v20 = vld [vmem:[#allocation8] ss:$0 sm:$0xff]  ;;  %v3349_v24 = vld [vmem:[#allocation13 + $0x30] sm:$0xff]  }
 0x241   : > { %854 = vadd.xlane.f32.xlu0 %v853_v3  ;;  %2942 = vmatprep.mubr.msk.bf16.mxu0 %vm4035_vm1, %v4034_v11  ;;  %v3350_v26 = vld [vmem:[#allocation13 + $0x28] sm:$0xff]   ;;  %v3351_v27 = vld [vmem:[#allocation13 + $0x38] sm:$0xff]   ;;  %v3362_v38 = vld [vmem:[#allocation19 + $0x8] sm:$0xff]   ;;  %s2503_s2 = sshll.u32 %s845_s28, 4  ;;  %s5046_s8 = sld [smem:[#allocation62_spill]]  ;;  %s4900_s2 = int_to_ptr.vmem [resolvable:$true] %s2503_s2 }
 0x242   : > { %2950 = vmatprep.mubr.msk.bf16.mxu1 %vm4035_vm1, %v4034_v11  ;;  %v3352_v28 = vld [vmem:[#allocation16] sm:$0xff]   ;;  %v3353_v29 = vld [vmem:[#allocation16 + $0x10] sm:$0xff]   ;;  %v3354_v30 = vld [vmem:[#allocation16 + $0x8] sm:$0xff]   ;;  %s2490_s22 = scalar_lea.sflag [#allocation4], %s4672_s9  ;;  %s3904_s18 = scalar_lea.vmem %s4900_s2, 128 }
 0x243   : > { %2941 = vmatpush3.bf16.msra.mxu0 %v3346_v12  ;;  %2949 = vmatpush3.bf16.msra.mxu1 %v3347_v13  ;;  %v3355_v31 = vld [vmem:[#allocation16 + $0x18] sm:$0xff]   ;;  %v3356_v32 = vld [vmem:[#allocation16 + $0x20] sm:$0xff]   ;;  %v3357_v33 = vld [vmem:[#allocation16 + $0x30] sm:$0xff]   ;;  %p3905_p1 = scmp.ne.s32.totalorder %s4900_s2, %s3904_s18  ;;  %p5047_p13 = scmp.ne.s32.totalorder %s5018_s23, 0 }
 0x244   : > { %2954 = vmatprep.subr.bf16.mxu0 %v4034_v11  ;;  %2962 = vmatprep.subr.bf16.mxu1 %v4034_v11  ;;  %v3358_v34 = vld [vmem:[#allocation16 + $0x28] sm:$0xff]   ;;  %v3359_v35 = vld [vmem:[#allocation16 + $0x38] sm:$0xff]   ;;  %v2821_v60 = vld [vmem:[#allocation17] ss:$0 sm:$0xff]  ;;  %s4036_s25 = smov [#allocation31]  }
 0x245   : > { %v3360_v36 = vld [vmem:[#allocation19] sm:$0xff]   ;;  %v3361_v37 = vld [vmem:[#allocation19 + $0x10] sm:$0xff]   ;;  %v3363_v39 = vld [vmem:[#allocation19 + $0x18] sm:$0xff]   ;;  %p3906_p0 = pnand %p3905_p1, %p5047_p13  ;;  %s3908_s1 = sshll.u32 %s4036_s25, 4  ;;  %s3909_s1 = int_to_ptr.vmem [resolvable:$false] %s3908_s1 }
 0x246   : > { %v3364_v40 = vld [vmem:[#allocation19 + $0x20] sm:$0xff]   ;;  %v3365_v41 = vld [vmem:[#allocation19 + $0x30] sm:$0xff]   ;;  %v3366_v42 = vld [vmem:[#allocation19 + $0x28] sm:$0xff]   ;;  %s3910_s5 = scalar_lea.vmem %s3909_s1, 256  ;;  %p3911_p10 = scmp.lt.s32.totalorder %s4900_s2, %s3909_s1 }
 0x247   : > { %v3367_v43 = vld [vmem:[#allocation19 + $0x38] sm:$0xff]   ;;  %s4898_s0 = scalar_lea.hbm %s5046_s8, %s2867_s29  ;;  %p3907_p2 = pneg %p3906_p0 }
 0x248   : > { %v2822_v61 = vld [vmem:[#allocation17 + $0x1] ss:$0 sm:$0xff]  ;;  %v2805_v10 = vld [vmem:[#allocation14] ss:$0 sm:$0xff]  ;;  %v2806_v12 = vld [vmem:[#allocation14 + $0x1] ss:$0 sm:$0xff]  ;;  %p3912_p11 = scmp.lt.s32.totalorder %s3910_s5, %s3904_s18 }
 0x24a   : > { %p3913_p5 = por %p3912_p11, %p3911_p10 }
 0x24c   : > { %p3914_p7 = pnand %p3913_p5, %p3907_p2 }
 0x2ce   : > { %v855_v4 = vpop.xlane.xlu0 %854 }
 0x2cf   : > { %v857_v5 = vmul.f32 0.03125, %v855_v4 }
 0x2d1   : > { %v858_v6 = vsub.f32 %v849_v2, %v857_v5 }
 0x2d3   : > { %v859_v7 = vmul.f32 %v858_v6, %v858_v6 }
 0x2d5   : > { %v860_v8 = vsel %vm852_vm0, %v859_v7, 0.0 }
 0x2d6   : > { %861 = vadd.xlane.f32.xlu0 %v860_v8 }
 0x363   : > { %v862_v14 = vpop.xlane.xlu0 %861 }
 0x364   : > { %v863_v15 = vmul.f32 0.03125, %v862_v14 }
 0x366   : > { %v864_v16 = vadd.f32 1e-05, %v863_v15  ;;  %v2823_v15 = vld [vmem:[#allocation17 + $0x2] ss:$0 sm:$0xff] }
 0x368   : > { %3374 = vrsqrt.f32 %v864_v16  ;;  %v2824_v16 = vld [vmem:[#allocation17 + $0x3] ss:$0 sm:$0xff] }
 0x372   : > { %v3375_v17 = vpop.eup %3374 }
 0x373   : > { %v866_v19 = vmul.f32 %v3375_v17, %v858_v6 }
 0x375   : > { %v873_v21 = vmul.f32 %v2791_v18, %v866_v19 }
 0x377   : > { %v4737_v22 = vadd.f32 %v2792_v20, %v873_v21 }
 0x379   : > { %v4741_v25 = vpack.c.bf16 %v4737_v22, %v4737_v22 }
 0x37b   : > { %2943 = vmatmul.mubr.msk.bf16.vlgmr.msra.gmra.mrb[0].mxu0 %vm852_vm0, %v4741_v25  ;;  %2951 = vmatmul.mubr.msk.bf16.vlgmr.msra.gmra.mrb[0].mxu1 %vm852_vm0, %v4741_v25 }
 0x37c   : > { %2955 = vmatpush3.bf16.msra.mxu0 %v3348_v23  ;;  %2963 = vmatpush3.bf16.msra.mxu1 %v3349_v24 }
 0x37d   : > { %2956 = vmatprep.subr.bf16.mxu0 %v4034_v11  ;;  %2964 = vmatprep.subr.bf16.mxu1 %v4034_v11 }
 0x37e   : > { %2958 = vmatprep.mubr.msk.bf16.mxu0 %vm4035_vm1, %v4034_v11  ;;  %2966 = vmatprep.mubr.msk.bf16.mxu1 %vm4035_vm1, %v4034_v11 }
 0x380   : > { %2957 = vmatpush3.bf16.msra.mxu0 %v3350_v26  ;;  %2965 = vmatpush3.bf16.msra.mxu1 %v3351_v27 }
 0x381   : > { %2970 = vmatprep.subr.bf16.mxu0 %v4034_v11  ;;  %2978 = vmatprep.subr.bf16.mxu1 %v4034_v11 }
 0x383   : > { %2959 = vmatmul.mubr.msk.bf16.vlgmr.msra.gmra.mrb[4].mxu0 %vm852_vm0, %v4741_v25  ;;  %2967 = vmatmul.mubr.msk.bf16.vlgmr.msra.gmra.mrb[4].mxu1 %vm852_vm0, %v4741_v25 }
 0x384   : > { %2971 = vmatpush3.bf16.msra.mxu0 %v3352_v28  ;;  %2979 = vmatpush3.bf16.msra.mxu1 %v3353_v29 }
 0x385   : > { %2972 = vmatprep.subr.bf16.mxu0 %v4034_v11  ;;  %2980 = vmatprep.subr.bf16.mxu1 %v4034_v11 }
 0x386   : > { %2974 = vmatprep.mubr.msk.bf16.mxu0 %vm4035_vm1, %v4034_v11  ;;  %2982 = vmatprep.mubr.msk.bf16.mxu1 %vm4035_vm1, %v4034_v11 }
 0x388   : > { %2973 = vmatpush3.bf16.msra.mxu0 %v3354_v30  ;;  %2981 = vmatpush3.bf16.msra.mxu1 %v3355_v31 }
 0x389   : > { %2986 = vmatprep.subr.bf16.mxu0 %v4034_v11  ;;  %2994 = vmatprep.subr.bf16.mxu1 %v4034_v11 }
 0x38b   : > { %2975 = vmatmul.mubr.msk.bf16.vlgmr.msra.gmra.mrb[8].mxu0 %vm852_vm0, %v4741_v25  ;;  %2983 = vmatmul.mubr.msk.bf16.vlgmr.msra.gmra.mrb[8].mxu1 %vm852_vm0, %v4741_v25 }
 0x38c   : > { %2987 = vmatpush3.bf16.msra.mxu0 %v3356_v32  ;;  %2995 = vmatpush3.bf16.msra.mxu1 %v3357_v33 }
 0x38d   : > { %2988 = vmatprep.subr.bf16.mxu0 %v4034_v11  ;;  %2996 = vmatprep.subr.bf16.mxu1 %v4034_v11 }
 0x38e   : > { %2990 = vmatprep.mubr.msk.bf16.mxu0 %vm4035_vm1, %v4034_v11  ;;  %2998 = vmatprep.mubr.msk.bf16.mxu1 %vm4035_vm1, %v4034_v11 }
 0x390   : > { %2989 = vmatpush3.bf16.msra.mxu0 %v3358_v34  ;;  %2997 = vmatpush3.bf16.msra.mxu1 %v3359_v35  ;;  %v2807_v34 = vld [vmem:[#allocation14 + $0x2] ss:$0 sm:$0xff]  ;;  %v2808_v35 = vld [vmem:[#allocation14 + $0x3] ss:$0 sm:$0xff] }
 0x391   : > { %3002 = vmatprep.subr.bf16.mxu0 %v4034_v11  ;;  %3010 = vmatprep.subr.bf16.mxu1 %v4034_v11 }
 0x393   : > { %2991 = vmatmul.mubr.msk.bf16.vlgmr.msra.gmra.mrb[12].mxu0 %vm852_vm0, %v4741_v25  ;;  %2999 = vmatmul.mubr.msk.bf16.vlgmr.msra.gmra.mrb[12].mxu1 %vm852_vm0, %v4741_v25 }
 0x394   : > { %3003 = vmatpush3.bf16.msra.mxu0 %v3360_v36  ;;  %3011 = vmatpush3.bf16.msra.mxu1 %v3361_v37 }
 0x395   : > { %3004 = vmatprep.subr.bf16.mxu0 %v4034_v11  ;;  %3012 = vmatprep.subr.bf16.mxu1 %v4034_v11 }
 0x396   : > { %3006 = vmatprep.mubr.msk.bf16.mxu0 %vm4035_vm1, %v4034_v11  ;;  %3014 = vmatprep.mubr.msk.bf16.mxu1 %vm4035_vm1, %v4034_v11 }
 0x398   : > { %3005 = vmatpush3.bf16.msra.mxu0 %v3362_v38  ;;  %3013 = vmatpush3.bf16.msra.mxu1 %v3363_v39  ;;  %v2837_v38 = vld [vmem:[#allocation20] ss:$0 sm:$0xff]  ;;  %v2838_v39 = vld [vmem:[#allocation20 + $0x1] ss:$0 sm:$0xff] }
 0x399   : > { %3018 = vmatprep.subr.bf16.mxu0 %v4034_v11  ;;  %3026 = vmatprep.subr.bf16.mxu1 %v4034_v11 }
 0x39b   : > { %3007 = vmatmul.mubr.msk.bf16.vlgmr.msra.gmra.mrb[16].mxu0 %vm852_vm0, %v4741_v25  ;;  %3015 = vmatmul.mubr.msk.bf16.vlgmr.msra.gmra.mrb[16].mxu1 %vm852_vm0, %v4741_v25 }
 0x39c   : > { %3019 = vmatpush3.bf16.msra.mxu0 %v3364_v40  ;;  %3027 = vmatpush3.bf16.msra.mxu1 %v3365_v41 }
 0x39d   : > { %3020 = vmatprep.subr.bf16.mxu0 %v4034_v11  ;;  %3028 = vmatprep.subr.bf16.mxu1 %v4034_v11 }
 0x39e   : > { %3022 = vmatprep.mubr.msk.bf16.mxu0 %vm4035_vm1, %v4034_v11  ;;  %3030 = vmatprep.mubr.msk.bf16.mxu1 %vm4035_vm1, %v4034_v11 }
 0x3a0   : > { %3021 = vmatpush3.bf16.msra.mxu0 %v3366_v42  ;;  %3029 = vmatpush3.bf16.msra.mxu1 %v3367_v43 }
 0x3a1   : > { %3034 = vmatprep.subr.bf16.mxu0 %v4034_v11  ;;  %3040 = vmatprep.subr.bf16.mxu1 %v4034_v11 }
 0x3a3   : > { %3023 = vmatmul.mubr.msk.bf16.vlgmr.msra.gmra.mrb[20].mxu0 %vm852_vm0, %v4741_v25  ;;  %3031 = vmatmul.mubr.msk.bf16.vlgmr.msra.gmra.mrb[20].mxu1 %vm852_vm0, %v4741_v25 }
 0x3a4   : > { %3036 = vmatprep.mubr.msk.bf16.mxu0 %vm4035_vm1, %v4034_v11  ;;  %3042 = vmatprep.mubr.msk.bf16.mxu1 %vm4035_vm1, %v4034_v11 }
 0x44e   : > { %v935_v44 = vpop.f32.mrb[0].mxu0  ;;  %v992_v45 = vpop.f32.mrb[0].mxu1 }
 0x44f   : > { %v2944_v46 = vpop.f32.mrb[1].mxu0  ;;  %v2952_v47 = vpop.f32.mrb[1].mxu1  ;;  %v1140_v17 = vadd.f32 %v2805_v10, %v935_v44  ;;  %v1141_v18 = vadd.f32 %v2806_v12, %v992_v45 }
 0x450   : > { %v938_v48 = vpop.f32.mrb[2].mxu0  ;;  %v995_v49 = vpop.f32.mrb[2].mxu1 }
 0x451   : > { %v2945_v50 = vpop.f32.mrb[3].mxu0  ;;  %v2953_v51 = vpop.f32.mrb[3].mxu1  ;;  %v1662_v28 = vpack.c.bf16 %v1140_v17, %v1140_v17  ;;  %v1663_v29 = vpack.c.bf16 %v1141_v18, %v1141_v18 }
 0x456   : > { %v1049_v52 = vpop.f32.mrb[4].mxu0  ;;  %v1106_v53 = vpop.f32.mrb[4].mxu1 }
 0x457   : > { %v2960_v54 = vpop.f32.mrb[5].mxu0  ;;  %v2968_v55 = vpop.f32.mrb[5].mxu1  ;;  %v1142_v40 = vadd.f32 %v2807_v34, %v1049_v52  ;;  %v1143_v41 = vadd.f32 %v2808_v35, %v1106_v53 }
 0x458   : > { %v1052_v56 = vpop.f32.mrb[6].mxu0  ;;  %v1109_v57 = vpop.f32.mrb[6].mxu1 }
 0x459   : > { %v2961_v58 = vpop.f32.mrb[7].mxu0  ;;  %v2969_v59 = vpop.f32.mrb[7].mxu1  ;;  %v1664_v50 = vpack.c.bf16 %v1142_v40, %v1142_v40  ;;  %v1665_v51 = vpack.c.bf16 %v1143_v41, %v1143_v41 }
 0x45e   : > { %v1194_v62 = vpop.f32.mrb[8].mxu0  ;;  %v1251_v63 = vpop.f32.mrb[8].mxu1 }
 0x45f   : > { %v1399_v0 = vadd.f32 %v2821_v60, %v1194_v62  ;;  %v1400_v1 = vadd.f32 %v2822_v61, %v1251_v63  ;;  %v2976_v2 = vpop.f32.mrb[9].mxu0  ;;  %v2984_v3 = vpop.f32.mrb[9].mxu1 }
 0x460   : > { %v1197_v4 = vpop.f32.mrb[10].mxu0  ;;  %v1254_v5 = vpop.f32.mrb[10].mxu1 }
 0x461   : > { %v1666_v6 = vpack.c.bf16 %v1399_v0, %v1399_v0  ;;  %v1667_v7 = vpack.c.bf16 %v1400_v1, %v1400_v1  ;;  %v2977_v8 = vpop.f32.mrb[11].mxu0  ;;  %v2985_v9 = vpop.f32.mrb[11].mxu1 }
 0x463   : > { %v1675_v13 = vsel %vm1670_vm2, %v1666_v6, 0  ;;  %v1721_v14 = vsel %vm1670_vm2, %v1667_v7, 0 }
 0x464   : > { %3035 = vmatpush3.bf16.xpose.msra.mxu0 %v1675_v13  ;;  %3041 = vmatpush3.bf16.xpose.msra.mxu1 %v1721_v14 }
 0x465   : > { %3046 = vmatprep.subr.bf16.mxu0 %v4034_v11  ;;  %3052 = vmatprep.subr.bf16.mxu1 %v4034_v11 }
 0x466   : > { %v1308_v19 = vpop.f32.mrb[12].mxu0  ;;  %v1365_v20 = vpop.f32.mrb[12].mxu1 }
 0x467   : > { %v1401_v21 = vadd.f32 %v2823_v15, %v1308_v19  ;;  %v1402_v23 = vadd.f32 %v2824_v16, %v1365_v20  ;;  %v2992_v24 = vpop.f32.mrb[13].mxu0  ;;  %v3000_v25 = vpop.f32.mrb[13].mxu1 }
 0x468   : > { %v1311_v26 = vpop.f32.mrb[14].mxu0  ;;  %v1368_v27 = vpop.f32.mrb[14].mxu1 }
 0x469   : > { %v1668_v30 = vpack.c.bf16 %v1401_v21, %v1401_v21  ;;  %v1669_v31 = vpack.c.bf16 %v1402_v23, %v1402_v23  ;;  %v2993_v32 = vpop.f32.mrb[15].mxu0  ;;  %v3001_v33 = vpop.f32.mrb[15].mxu1 }
 0x46b   : > { %v1767_v36 = vsel %vm1670_vm2, %v1668_v30, 0  ;;  %v1813_v37 = vsel %vm1670_vm2, %v1669_v31, 0  ;;  %3037 = vmatmul.mubr.msk.bf16.vlgmr.msra.gmra.mrb[24].mxu0 %vm1670_vm2, %v1662_v28  ;;  %3043 = vmatmul.mubr.msk.bf16.vlgmr.msra.gmra.mrb[24].mxu1 %vm1670_vm2, %v1663_v29 }
 0x46c   : > { %3047 = vmatpush3.bf16.xpose.msra.mxu0 %v1767_v36  ;;  %3053 = vmatpush3.bf16.xpose.msra.mxu1 %v1813_v37 }
 0x46d   : > { %3048 = vmatprep.mubr.msk.bf16.mxu0 %vm4035_vm1, %v4034_v11  ;;  %3054 = vmatprep.mubr.msk.bf16.mxu1 %vm4035_vm1, %v4034_v11 }
 0x46e   : > { %v1453_v42 = vpop.f32.mrb[16].mxu0  ;;  %v1510_v43 = vpop.f32.mrb[16].mxu1  ;;  %3058 = vmatprep.subr.bf16.mxu0 %v4034_v11  ;;  %3064 = vmatprep.subr.bf16.mxu1 %v4034_v11 }
 0x46f   : > { %v1658_v44 = vadd.f32 %v2837_v38, %v1453_v42  ;;  %v1659_v45 = vadd.f32 %v2838_v39, %v1510_v43  ;;  %v3008_v46 = vpop.f32.mrb[17].mxu0  ;;  %v3016_v47 = vpop.f32.mrb[17].mxu1 }
 0x470   : > { %v1456_v48 = vpop.f32.mrb[18].mxu0  ;;  %v1513_v49 = vpop.f32.mrb[18].mxu1  ;;  %v2839_v46 = vld [vmem:[#allocation20 + $0x2] ss:$0 sm:$0xff] }
 0x471   : > { %v1903_v52 = vpack.c.bf16 %v1658_v44, %v1658_v44  ;;  %v1904_v53 = vpack.c.bf16 %v1659_v45, %v1659_v45  ;;  %v3009_v54 = vpop.f32.mrb[19].mxu0  ;;  %v3017_v55 = vpop.f32.mrb[19].mxu1  ;;  %v2840_v49 = vld [vmem:[#allocation20 + $0x3] ss:$0 sm:$0xff] }
 0x473   : > { %v1912_v56 = vsel %vm1910_vm3, %v1903_v52, 0  ;;  %v1958_v57 = vsel %vm1910_vm3, %v1904_v53, 0  ;;  %3049 = vmatmul.mubr.msk.bf16.vlgmr.msra.gmra.mrb[28].mxu0 %vm1670_vm2, %v1664_v50  ;;  %3055 = vmatmul.mubr.msk.bf16.vlgmr.msra.gmra.mrb[28].mxu1 %vm1670_vm2, %v1665_v51 }
 0x474   : > { %3059 = vmatpush3.bf16.msra.mxu0 %v1912_v56  ;;  %3065 = vmatpush3.bf16.msra.mxu1 %v1958_v57 }
 0x475   : > { %3060 = vmatprep.mubr.msk.bf16.mxu0 %vm4035_vm1, %v4034_v11  ;;  %3070 = vmatprep.subr.bf16.mxu0 %v4034_v11 }
 0x476   : > { %v4832_v58 = vpop.f32.mrb[20].mxu0  ;;  %v4834_v59 = vpop.f32.mrb[20].mxu1  ;;  %3066 = vmatprep.mubr.msk.bf16.mxu1 %vm4035_vm1, %v4034_v11  ;;  %3076 = vmatprep.subr.bf16.mxu1 %v4034_v11 }
 0x477   : > { %v3024_v60 = vpop.f32.mrb[21].mxu0  ;;  %v3032_v61 = vpop.f32.mrb[21].mxu1  ;;  %v1660_v47 = vadd.f32 %v2839_v46, %v4832_v58  ;;  %v1661_v53 = vadd.f32 %v2840_v49, %v4834_v59 }
 0x478   : > { %v1570_v62 = vpop.f32.mrb[22].mxu0  ;;  %v1627_v63 = vpop.f32.mrb[22].mxu1 }
 0x479   : > { %v3025_v0 = vpop.f32.mrb[23].mxu0  ;;  %v3033_v1 = vpop.f32.mrb[23].mxu1  ;;  %v1905_v52 = vpack.c.bf16 %v1660_v47, %v1660_v47  ;;  %v1906_v60 = vpack.c.bf16 %v1661_v53, %v1661_v53 }
 0x47b   : > { %v2004_v57 = vsel %vm1910_vm3, %v1905_v52, 0  ;;  %v2050_v59 = vsel %vm1910_vm3, %v1906_v60, 0 }
 0x53e   : > { %v1711_v2 = vpop.f32.mrb[24].mxu0  ;;  %v1757_v3 = vpop.f32.mrb[24].mxu1 }
 0x53f   : > { %v3038_v4 = vpop.f32.mrb[25].mxu0  ;;  %v3044_v5 = vpop.f32.mrb[25].mxu1  ;;  %v1855_v6 = vsel %vm1670_vm2, %v1711_v2, -inf  ;;  %v1858_v12 = vsel %vm1670_vm2, %v1757_v3, -inf }
 0x540   : > { %v1760_v7 = vpop.f32.mrb[26].mxu1  ;;  %1856 = vmax.xlane.f32.xlu1 %v1855_v6  ;;  %v1714_v8 = vpop.f32.mrb[26].mxu0  ;;  %v2093_v4 = vld [vmem:[#allocation22] sm:$0xf]  ;;  %v2096_v6 = vld [vmem:[#allocation22 + $0x4] sm:$0xf] }
 0x541   : > { %v3039_v9 = vpop.f32.mrb[27].mxu0  ;;  %v3045_v10 = vpop.f32.mrb[27].mxu1  ;;  %v2147_v5 = vsel %vm1910_vm3, %v2093_v4, 0  ;;  %v2101_v7 = vsel %vm1910_vm3, %v2096_v6, 0  ;;  %v2241_v8 = vld [vmem:[#allocation22 + $0xc] sm:$0xf] }
 0x544   : > { %1859 = vmax.xlane.f32.xlu1 %v1858_v12 }
 0x546   : > { %v1803_v13 = vpop.f32.mrb[28].mxu0  ;;  %v1849_v14 = vpop.f32.mrb[28].mxu1 }
 0x547   : > { %v3050_v15 = vpop.f32.mrb[29].mxu0  ;;  %v3056_v16 = vpop.f32.mrb[29].mxu1  ;;  %v1864_v17 = vsel %vm1670_vm2, %v1849_v14, -inf  ;;  %v1861_v18 = vsel %vm1670_vm2, %v1803_v13, -inf }
 0x548   : > { %v1852_v19 = vpop.f32.mrb[30].mxu1  ;;  %1865 = vmax.xlane.f32.xlu1 %v1864_v17  ;;  %1862 = vmax.xlane.f32.xlu0 %v1861_v18  ;;  %v1806_v20 = vpop.f32.mrb[30].mxu0  ;;  %v2191_v15 = vld [vmem:[#allocation22 + $0x8] sm:$0xf] }
 0x549   : > { %v3051_v21 = vpop.f32.mrb[31].mxu0  ;;  %v3057_v23 = vpop.f32.mrb[31].mxu1  ;;  %v2196_v20 = vsel %vm1910_vm3, %v2191_v15, 0 }
 0x5cd   : > { %v1857_v24 = vpop.xlane.xlu1 %1856 }
 0x5ce   : > { %v1867_v25 = vsub.f32 %v1711_v2, %v1857_v24 }
 0x5d0   : > { %v1871_v26 = vmul.f32 1.442695, %v1867_v25 }
 0x5d1   : > { %v1860_v27 = vpop.xlane.xlu1 %1859 }
 0x5d2   : > { %3376 = vpow2.f32 %v1871_v26  ;;  %v1868_v28 = vsub.f32 %v1757_v3, %v1860_v27 }
 0x5d4   : > { %v1873_v29 = vmul.f32 1.442695, %v1868_v28 }
 0x5d5   : > { %v1866_v30 = vpop.xlane.xlu1 %1865  ;;  %v1863_v31 = vpop.xlane.xlu0 %1862 }
 0x5d6   : > { %3378 = vpow2.f32 %v1873_v29  ;;  %v1870_v32 = vsub.f32 %v1849_v14, %v1866_v30  ;;  %v1869_v33 = vsub.f32 %v1803_v13, %v1863_v31  ;;  %v2246_v13 = vsel %vm1910_vm3, %v2241_v8, 0 }
 0x5d8   : > { %v1877_v34 = vmul.f32 1.442695, %v1870_v32  ;;  %v1875_v35 = vmul.f32 1.442695, %v1869_v33 }
 0x5da   : > { %3380 = vpow2.f32 %v1877_v34 }
 0x5db   : > { %3382 = vpow2.f32 %v1875_v35 }
 0x5dc   : > { %v3377_v36 = vpop.eup %3376 }
 0x5dd   : > { %v1879_v37 = vsel %vm1670_vm2, %v3377_v36, 0.0 }
 0x5de   : > { %1880 = vadd.xlane.f32.xlu0 %v1879_v37 }
 0x5e0   : > { %v3379_v38 = vpop.eup %3378 }
 0x5e1   : > { %v1882_v39 = vsel %vm1670_vm2, %v3379_v38, 0.0 }
 0x5e2   : > { %1883 = vadd.xlane.f32.xlu1 %v1882_v39 }
 0x5e4   : > { %v3381_v40 = vpop.eup %3380 }
 0x5e5   : > { %v3383_v41 = vpop.eup %3382  ;;  %v1888_v42 = vsel %vm1670_vm2, %v3381_v40, 0.0 }
 0x5e6   : > { %1889 = vadd.xlane.f32.xlu1 %v1888_v42  ;;  %v1885_v43 = vsel %vm1670_vm2, %v3383_v41, 0.0 }
 0x5e7   : > { %1886 = vadd.xlane.f32.xlu0 %v1885_v43 }
 0x66b   : > { %v1881_v44 = vpop.xlane.xlu0 %1880 }
 0x66c   : > { %3384 = vrcp.f32 %v1881_v44 }
 0x66f   : > { %v1884_v45 = vpop.xlane.xlu1 %1883 }
 0x670   : > { %3386 = vrcp.f32 %v1884_v45 }
 0x673   : > { %v1890_v48 = vpop.xlane.xlu1 %1889 }
 0x674   : > { %3388 = vrcp.f32 %v1890_v48  ;;  %v1887_v50 = vpop.xlane.xlu0 %1886  ;;  %v2853_v48 = vld [vmem:[#allocation23] ss:$0 sm:$0xff] }
 0x675   : > { %3390 = vrcp.f32 %v1887_v50 }
 0x676   : > { %v3385_v51 = vpop.eup %3384 }
 0x677   : > { %v1895_v54 = vmul.f32 %v3385_v51, %v3377_v36 }
 0x679   : > { %v1899_v55 = vpack.c.bf16 %v1895_v54, %v1895_v54 }
 0x67a   : > { %v3387_v56 = vpop.eup %3386 }
 0x67b   : > { %v1896_v61 = vmul.f32 %v3387_v56, %v3379_v38  ;;  %3061 = vmatmul.mubr.msk.bf16.vlgmr.msra.gmra.mrb[32].mxu0 %vm1670_vm2, %v1899_v55 }
 0x67c   : > { %3071 = vmatpush3.bf16.msra.mxu0 %v2004_v57  ;;  %3072 = vmatprep.mubr.msk.bf16.mxu0 %vm4035_vm1, %v4034_v11 }
 0x67d   : > { %v1900_v58 = vpack.c.bf16 %v1896_v61, %v1896_v61  ;;  %3082 = vmatprep.subr.bf16.mxu0 %v4034_v11 }
 0x67e   : > { %v3389_v62 = vpop.eup %3388 }
 0x67f   : > { %v3391_v63 = vpop.eup %3390  ;;  %3067 = vmatmul.mubr.msk.bf16.vlgmr.msra.gmra.mrb[32].mxu1 %vm1670_vm2, %v1900_v58  ;;  %v1898_v1 = vmul.f32 %v3389_v62, %v3381_v40 }
 0x680   : > { %v1897_v0 = vmul.f32 %v3391_v63, %v3383_v41  ;;  %3077 = vmatpush3.bf16.msra.mxu1 %v2050_v59  ;;  %3078 = vmatprep.mubr.msk.bf16.mxu1 %vm4035_vm1, %v4034_v11  ;;  %v3368_v63 = vld [vmem:[#allocation25] sm:$0xff]   ;;  %v3369_v59 = vld [vmem:[#allocation25 + $0x8] sm:$0xff]  }
 0x681   : > { %3088 = vmatprep.subr.bf16.mxu1 %v4034_v11  ;;  %v1902_v3 = vpack.c.bf16 %v1898_v1, %v1898_v1 }
 0x682   : > { %v1901_v2 = vpack.c.bf16 %v1897_v0, %v1897_v0 }
 0x684   : > { %3073 = vmatmul.mubr.msk.bf16.vlgmr.msra.gmra.mrb[36].mxu0 %vm1670_vm2, %v1901_v2 }
 0x685   : > { %3084 = vmatprep.mubr.msk.bf16.mxu0 %vm4035_vm1, %v4034_v11  ;;  %3083 = vmatpush3.bf16.msra.mxu0 %v2101_v7 }
 0x686   : > { %3094 = vmatprep.subr.bf16.mxu0 %v4034_v11 }
 0x687   : > { %3079 = vmatmul.mubr.msk.bf16.vlgmr.msra.gmra.mrb[36].mxu1 %vm1670_vm2, %v1902_v3  ;;  %v2854_v3 = vld [vmem:[#allocation10] ss:$0 sm:$0xff] }
 0x688   : > { %3090 = vmatprep.mubr.msk.bf16.mxu1 %vm4035_vm1, %v4034_v11  ;;  %3089 = vmatpush3.bf16.msra.mxu1 %v2147_v5  ;;  %v2855_v5 = vld [vmem:[#allocation11] ss:$0 sm:$0xff] }
 0x689   : > { %3100 = vmatprep.subr.bf16.mxu1 %v4034_v11 }
 0x74e   : > { %v1948_v9 = vpop.f32.mrb[32].mxu0 }
 0x74f   : > { %v2092_v10 = vpack.c.bf16 %v1948_v9, %v1948_v9  ;;  %v3062_v12 = vpop.f32.mrb[33].mxu0  ;;  %v3370_v9 = vld [vmem:[#allocation28] sm:$0xff]  }
 0x750   : > { %v1951_v14 = vpop.f32.mrb[34].mxu0  ;;  %v3372_v12 = vld [vmem:[#allocation28 + $0x10] sm:$0xff]  }
 0x751   : > { %v3063_v16 = vpop.f32.mrb[35].mxu0  ;;  %3091 = vmatmul.mubr.msk.bf16.vlgmr.msra.gmra.mrb[40].mxu1 %vm1670_vm2, %v2092_v10  ;;  %v3371_v10 = vld [vmem:[#allocation28 + $0x8] sm:$0xff]   ;;  %v2856_v14 = vld [vmem:[#allocation26] ss:$0 sm:$0xff] }
 0x752   : > { %v1994_v17 = vpop.f32.mrb[32].mxu1  ;;  %3101 = vmatpush3.bf16.msra.mxu1 %v2246_v13  ;;  %3102 = vmatprep.mubr.msk.bf16.mxu1 %vm4035_vm1, %v4034_v11  ;;  %v3373_v13 = vld [vmem:[#allocation28 + $0x18] sm:$0xff]  }
 0x753   : > { %v2094_v18 = vpack.c.bf16 %v1994_v17, %v1994_v17  ;;  %v3068_v19 = vpop.f32.mrb[33].mxu1  ;;  %3114 = vmatprep.subr.bf16.mxu1 %v4034_v11 }
 0x754   : > { %v1997_v21 = vpop.f32.mrb[34].mxu1 }
 0x755   : > { %v3069_v23 = vpop.f32.mrb[35].mxu1  ;;  %3085 = vmatmul.mubr.msk.bf16.vlgmr.msra.gmra.mrb[40].mxu0 %vm1670_vm2, %v2094_v18 }
 0x756   : > { %3095 = vmatpush3.bf16.msra.mxu0 %v2196_v20  ;;  %3096 = vmatprep.mubr.msk.bf16.mxu0 %vm4035_vm1, %v4034_v11 }
 0x757   : > { %v2040_v24 = vpop.f32.mrb[36].mxu0  ;;  %3106 = vmatprep.subr.bf16.mxu0 %v4034_v11 }
 0x758   : > { %v3074_v25 = vpop.f32.mrb[37].mxu0  ;;  %v2189_v29 = vpack.c.bf16 %v2040_v24, %v2040_v24 }
 0x759   : > { %v2043_v26 = vpop.f32.mrb[38].mxu0 }
 0x75a   : > { %v3075_v27 = vpop.f32.mrb[39].mxu0  ;;  %v2086_v28 = vpop.f32.mrb[36].mxu1 }
 0x75b   : > { %v2239_v30 = vpack.c.bf16 %v2086_v28, %v2086_v28  ;;  %v3080_v31 = vpop.f32.mrb[37].mxu1 }
 0x75c   : > { %v2089_v32 = vpop.f32.mrb[38].mxu1 }
 0x75d   : > { %v3081_v33 = vpop.f32.mrb[39].mxu1  ;;  %3097 = vmatmul.mubr.msk.bf16.vlgmr.msra.gmra.mrb[44].mxu0 %vm1670_vm2, %v2189_v29  ;;  %3103 = vmatmul.mubr.msk.bf16.vlgmr.msra.gmra.mrb[44].mxu1 %vm1670_vm2, %v2239_v30  ;;  %v2860_v30 = vld [vmem:[#allocation29] ss:$0 sm:$0xff] }
 0x75e   : > { %3110 = vmatprep.mubr.msk.bf16.mxu0 %vm4035_vm1, %v4034_v11  ;;  %3122 = vmatprep.mubr.msk.bf16.mxu1 %vm4035_vm1, %v4034_v11 }
 0x75f   : > { %3107 = vmatpush3.bf16.msra.mxu0 %v3368_v63  ;;  %3115 = vmatpush3.bf16.msra.mxu1 %v3370_v9 }
 0x760   : > { %3108 = vmatprep.subr.bf16.mxu0 %v4034_v11  ;;  %3116 = vmatprep.subr.bf16.mxu1 %v4034_v11 }
 0x763   : > { %3109 = vmatpush3.bf16.msra.mxu0 %v3369_v59  ;;  %3117 = vmatpush3.bf16.msra.mxu1 %v3371_v10 }
 0x764   : > { %3118 = vmatprep.subr.bf16.mxu1 %v4034_v11 }
 0x767   : > { %3119 = vmatpush3.bf16.msra.mxu1 %v3372_v12 }
 0x768   : > { %3120 = vmatprep.subr.bf16.mxu1 %v4034_v11 }
 0x76b   : > { %3121 = vmatpush3.bf16.msra.mxu1 %v3373_v13 }
 0x824   : > { %v2183_v34 = vpop.f32.mrb[40].mxu1 }
 0x825   : > { %v3092_v35 = vpop.f32.mrb[41].mxu1 }
 0x826   : > { %v2186_v36 = vpop.f32.mrb[42].mxu1 }
 0x827   : > { %v3093_v37 = vpop.f32.mrb[43].mxu1 }
 0x828   : > { %v2137_v38 = vpop.f32.mrb[40].mxu0 }
 0x829   : > { %v2184_v39 = vadd.f32 %v2183_v34, %v2137_v38  ;;  %v3086_v40 = vpop.f32.mrb[41].mxu0 }
 0x82a   : > { %v2140_v41 = vpop.f32.mrb[42].mxu0 }
 0x82b   : > { %v3087_v42 = vpop.f32.mrb[43].mxu0 }
 0x830   : > { %v2232_v43 = vpop.f32.mrb[44].mxu0  ;;  %v2282_v44 = vpop.f32.mrb[44].mxu1 }
 0x831   : > { %v2238_v45 = vadd.f32 %v2232_v43, %v2184_v39  ;;  %v3098_v46 = vpop.f32.mrb[45].mxu0  ;;  %v3104_v47 = vpop.f32.mrb[45].mxu1 }
 0x832   : > { %v2235_v49 = vpop.f32.mrb[46].mxu0  ;;  %v2285_v50 = vpop.f32.mrb[46].mxu1 }
 0x833   : > { %v2288_v51 = vadd.f32 %v2282_v44, %v2238_v45  ;;  %v3099_v52 = vpop.f32.mrb[47].mxu0  ;;  %v3105_v53 = vpop.f32.mrb[47].mxu1 }
 0x835   : > { %v2296_v54 = vadd.f32 %v2853_v48, %v2288_v51 }
 0x837   : > { %v2297_v55 = vadd.f32 %v2296_v54, %v4737_v22 }
 0x839   : > { %v2300_v56 = vsel %vm852_vm0, %v2297_v55, 0.0 }
 0x83a   : > { %2301 = vadd.xlane.f32.xlu0 %v2300_v56 }
 0x8c7   : > { %v2302_v57 = vpop.xlane.xlu0 %2301 }
 0x8c8   : > { %v2303_v60 = vmul.f32 0.03125, %v2302_v57 }
 0x8ca   : > { %v2304_v61 = vsub.f32 %v2297_v55, %v2303_v60 }
 0x8cc   : > { %v2305_v58 = vmul.f32 %v2304_v61, %v2304_v61 }
 0x8ce   : > { %v2306_v62 = vsel %vm852_vm0, %v2305_v58, 0.0 }
 0x8cf   : > { %2307 = vadd.xlane.f32.xlu1 %v2306_v62 }
 0x95c   : > { %v2308_v0 = vpop.xlane.xlu1 %2307 }
 0x95d   : > { %v2309_v1 = vmul.f32 0.03125, %v2308_v0 }
 0x95f   : > { %v2310_v2 = vadd.f32 1e-05, %v2309_v1 }
 0x961   : > { %3392 = vrsqrt.f32 %v2310_v2 }
 0x96b   : > { %v3393_v22 = vpop.eup %3392 }
 0x96c   : > { %v2312_v4 = vmul.f32 %v3393_v22, %v2304_v61 }
 0x96e   : > { %v2319_v6 = vmul.f32 %v2854_v3, %v2312_v4 }
 0x970   : > { %v2326_v7 = vadd.f32 %v2855_v5, %v2319_v6 }
 0x972   : > { %v2327_v8 = vpack.c.bf16 %v2326_v7, %v2326_v7 }
 0x974   : > { %3111 = vmatmul.mubr.msk.bf16.vlgmr.msra.gmra.mrb[48].mxu0 %vm852_vm0, %v2327_v8 }
 0xa47   : > { %v2388_v15 = vpop.f32.mrb[48].mxu0 }
 0xa48   : > { %v2389_v16 = vadd.f32 %v2856_v14, %v2388_v15  ;;  %v3112_v17 = vpop.f32.mrb[49].mxu0 }
 0xa49   : > { %v2391_v18 = vpop.f32.mrb[50].mxu0 }
 0xa4a   : > { %v2394_v19 = vmul.f32 %v2389_v16, %v2389_v16  ;;  %v3113_v20 = vpop.f32.mrb[51].mxu0 }
 0xa4c   : > { %v2395_v21 = vmul.f32 %v2394_v19, %v2389_v16 }
 0xa4e   : > { %v2396_v23 = vmul.f32 0.044715, %v2395_v21 }
 0xa50   : > { %v2397_v24 = vadd.f32 %v2396_v23, %v2389_v16 }
 0xa52   : > { %v2398_v25 = vmul.f32 0.7978846, %v2397_v24 }
 0xa54   : > { %3394 = vtanh.f32 %v2398_v25 }
 0xa5e   : > { %v3395_v26 = vpop.eup %3394 }
 0xa5f   : > { %v2400_v27 = vadd.f32 1.0, %v3395_v26 }
 0xa61   : > { %v2401_v28 = vmul.f32 0.5, %v2400_v27 }
 0xa63   : > { %v2402_v11 = vmul.f32 %v2401_v28, %v2389_v16 }
 0xa65   : > { %v2403_v29 = vpack.c.bf16 %v2402_v11, %v2402_v11 }
 0xa67   : > { %3123 = vmatmul.mubr.msk.bf16.vlgmr.msra.gmra.mrb[48].mxu1 %vm2443_vm4, %v2403_v29 }
 0xb3a   : > { %v2481_v31 = vpop.f32.mrb[48].mxu1 }
 0xb3b   : > { %v2482_v32 = vadd.f32 %v2860_v30, %v2481_v31  ;;  %v3124_v33 = vpop.f32.mrb[49].mxu1 }
 0xb3c   : > { %v2484_v34 = vpop.f32.mrb[50].mxu1 }
 0xb3d   : > { %v2487_v35 = vadd.f32 %v2482_v32, %v2326_v7  ;;  %v3125_v36 = vpop.f32.mrb[51].mxu1 }
 0xb3f   : > { %2488 = vst.msk [vmem:[%s845_s28] sm:$0xff] %vm852_vm0, %v2487_v35 }
 0xb40   : > { %3917 = shalt.err (!%p3914_p7)
}
 0xb41   : > { %s3918_s9 = scalar_lea.hbm %s4898_s0, 128  ;;  %s3922_s19 = scalar_lea.hbm %s5046_s8, 256 }
 0xb42   : > { %p3919_p3 = scmp.ne.s32.totalorder %s4898_s0, %s3918_s9  ;;  %p3923_p8 = scmp.lt.u32.totalorder %s4898_s0, %s5046_s8 }
 0xb43   : > { %p3924_p9 = scmp.lt.u32.totalorder %s3922_s19, %s3918_s9  ;;  %p3926_p1 = scmp.lt.u32.totalorder %s3918_s9, %s4898_s0 }
 0xb44   : > { %p3920_p6 = pnand %p3919_p3, %p5047_p13 }
 0xb45   : > { %p3925_p4 = por %p3924_p9, %p3923_p8 }
 0xb46   : > { %p3921_p12 = pneg %p3920_p6 }
 0xb47   : > { %p3927_p0 = por %p3926_p1, %p3925_p4 }
 0xb49   : > { %p3928_p2 = pnand %p3927_p0, %p3921_p12 }
 0xb4b   : > { %3931 = shalt.err (!%p3928_p2)
}
 0xb4c   : > { %3194 = dma.vmem_to_hbm [thread:$0]  (%p5047_p13), %s4900_s2, 128, %s4898_s0, %s2490_s22  }
 0xb4d PF: > { %s5048_s29 = sld [smem:[#allocation44_spill]]  ;;  %s5049_s28 = sld [smem:[#allocation47_spill]] }
 0xb4e   : > { %p5050_p10 = scmp.ne.s32.totalorder %s5019_s21, 0 }
 0xb53   : > { %s2515_s11 = sand.u32 1, %s5048_s29   ;;  %p5051_p11 = scmp.ge.s32.totalorder %s5049_s28, 2 }
 0xb54   : > { %s2516_s4 = scalar_lea.sflag [#allocation4], %s2515_s11 }
 0xb55   : > { %p3253_p5 = pnand %p5051_p11, %p5050_p10 }
 0xb57   : > { %3993 = dma.done.wait (!%p3253_p5), %s2516_s4, 128  }
 0xb58   : > { %3995 = vsyncadd (!%p3253_p5), %s2516_s4, 4294967168  ;;  %s5052_s27 = sld [smem:[#allocation45_spill]]  ;;  %s5053_s28 = sld [smem:[#allocation46_spill]] }
 0xb59   : > { %p42_p7 = scmp.ge.s32.totalorder %s4565_s30, 4   ;;  %s5054_s29 = smov %s4576_s3 }
 0xb5b   :  { %44 = sbr.rel (!%p42_p7) target bundleno = 29 (0x1d), region = 226 }
 0xb62   :  { %2521 = vsyncpa [#allocation3], 1 }
 0xb63   :  { %2523 = vsyncpa [#allocation3 + $0x1], 1 }
 0xb64   :  { %2524 = vsyncpa [#allocation6], 1 }
 0xb65   :  { %2526 = vsyncpa [#allocation6 + $0x1], 1 }
 0xb66   :  { %2527 = vsyncpa [#allocation9], 1 }
 0xb67   :  { %2528 = vsyncpa [#allocation12], 1 }
 0xb68   :  { %2529 = vsyncpa [#allocation15], 1 }
 0xb69   :  { %2530 = vsyncpa [#allocation18], 1 }
 0xb6a   :  { %2531 = vsyncpa [#allocation21], 1 }
 0xb6b   :  { %2532 = vsyncpa [#allocation24], 1 }
 0xb6c   :  { %2533 = vsyncpa [#allocation27], 1 }
 0xb6d   :  { %2534 = vsyncpa [#allocation30], 1 }
 0xb6e   :  { %2535 = vsyncpa [#allocation4], 1 }
 0xb6f   :  { %2537 = vsyncpa [#allocation4 + $0x1], 1 }

</bundles_post_ra>
